<compile_context>
chip_gen: v6e
topology: v6e:2x2x1
jax: 0.10.0
libtpu: 0.0.40
codegen_flags: <defaults>
</compile_context>

<pallas_src>
import jax
import jax.numpy as jnp
from jax.experimental import pallas as pl
from jax.experimental.pallas import tpu as pltpu

INPUT_SIZE = 784
HIDDEN_SIZES = [512, 256, 256, 128]
NUM_CLASSES = 10
OUT_PAD = 128          # lane-dense padded width of the final layer (>= NUM_CLASSES)
MAX_TB = 1024          # upper bound on the batch tile (matmul M)


def _mlp_kernel(x_ref,
                w0_ref, b0_ref,
                w1_ref, b1_ref,
                w2_ref, b2_ref,
                w3_ref, b3_ref,
                w4_ref, b4_ref,
                o_ref):
    """Fused forward pass of the whole MLP for one (TB, 784) batch tile."""
    # fp32 -> bf16 cast happens here (not as a separate XLA pass over HBM).
    h = x_ref[...].astype(jnp.bfloat16)

    def linear(h, w_ref, b_ref):
        # bf16 x bf16 matmul, fp32 accumulate on the MXU; bias is fp32.
        return jnp.dot(h, w_ref[...], preferred_element_type=jnp.float32) + b_ref[...]

    # hidden layers: Linear -> ReLU (back to bf16 to feed the next MXU pass)
    h = jnp.maximum(linear(h, w0_ref, b0_ref), 0.0).astype(jnp.bfloat16)
    h = jnp.maximum(linear(h, w1_ref, b1_ref), 0.0).astype(jnp.bfloat16)
    h = jnp.maximum(linear(h, w2_ref, b2_ref), 0.0).astype(jnp.bfloat16)
    h = jnp.maximum(linear(h, w3_ref, b3_ref), 0.0).astype(jnp.bfloat16)
    # output layer: Linear (no activation), lane-dense padded to 128 wide
    o_ref[...] = linear(h, w4_ref, b4_ref).astype(o_ref.dtype)


def _round_up(x, m):
    return -(-x // m) * m


def _pick_tb(b):
    """Batch tile selection (static, from the trace-time batch size)."""
    if b <= 256:
        # Small-batch path: single tile, minimal zero-row padding (8 sublanes).
        return _round_up(b, 8)
    # Large-batch path: >= 2 grid steps so v7x can use both TensorCores,
    # tile capped at 1024 rows (well within the 32 MiB VMEM budget below).
    return min(MAX_TB, _round_up(-(-b // 2), 128))


def _resident_spec(shape):
    """Whole-array block whose block index never advances with the batch grid.

    Keeps weights/biases VMEM-resident across all grid steps; Buffered(1)
    drops the unused second pipeline buffer (constant index map => no
    prefetch needed).
    """
    nd = len(shape)
    return pl.BlockSpec(shape, lambda i, _nd=nd: (0,) * _nd,
                        pipeline_mode=pl.Buffered(1))


def init_params(key):
    """Deterministic init mimicking nn.Linear default: U(-1/sqrt(fan_in), +)."""
    sizes = [INPUT_SIZE] + HIDDEN_SIZES + [NUM_CLASSES]
    params = []
    for li in range(len(sizes) - 1):
        fan_in, fan_out = sizes[li], sizes[li + 1]
        key, kw, kb = jax.random.split(key, 3)
        bound = 1.0 / (fan_in ** 0.5)
        w = jax.random.uniform(kw, (fan_in, fan_out), jnp.float32, -bound, bound)
        b = jax.random.uniform(kb, (1, fan_out), jnp.float32, -bound, bound)
        params.append((w, b))
    return params


@jax.jit
def base_network_forward(x_nchw, params):
    """x_nchw: (B, 1, 28, 28) float32 -> logits (B, NUM_CLASSES) float32."""
    b = x_nchw.shape[0]
    x = x_nchw.reshape(b, -1)          # == torch x.view(B, -1); stays fp32 here

    tb = _pick_tb(b)
    b_pad = _round_up(b, tb)
    if b_pad != b:
        x = jnp.pad(x, ((0, b_pad - b), (0, 0)))

    flat_params = []
    in_specs = [pl.BlockSpec((tb, INPUT_SIZE), lambda i: (i, 0))]
    for li, (w, bias) in enumerate(params):
        w = w.astype(jnp.bfloat16)
        bias = bias.astype(jnp.float32)
        if li == len(params) - 1:
            # Lane-dense final layer: zero-pad N from 10 -> 128.
            w = jnp.pad(w, ((0, 0), (0, OUT_PAD - NUM_CLASSES)))
            bias = jnp.pad(bias, ((0, 0), (0, OUT_PAD - NUM_CLASSES)))
        flat_params += [w, bias]
        in_specs += [_resident_spec(w.shape), _resident_spec(bias.shape)]

    out = pl.pallas_call(
        _mlp_kernel,
        out_shape=jax.ShapeDtypeStruct((b_pad, OUT_PAD), jnp.float32),
        grid=(b_pad // tb,),
        in_specs=in_specs,
        out_specs=pl.BlockSpec((tb, OUT_PAD), lambda i: (i, 0)),
        compiler_params=pltpu.CompilerParams(
            # Batch tiles are independent -> shard across TensorCores on v7x.
            dimension_semantics=("parallel",),
            vmem_limit_bytes=32 * 1024 * 1024),
    )(x, *flat_params)

    # Strip batch padding and the lane padding of the final layer.
    return out[:b, :NUM_CLASSES]


def _reference_forward(x_nchw, params):
    """Pure-JAX reference using the same bf16-matmul / fp32-accumulate recipe."""
    x = x_nchw.reshape(x_nchw.shape[0], -1).astype(jnp.bfloat16)
    for i, (w, bias) in enumerate(params):
        x = jnp.dot(x, w.astype(jnp.bfloat16),
                    preferred_element_type=jnp.float32) + bias
        if i < len(params) - 1:
            x = jnp.maximum(x, 0.0).astype(jnp.bfloat16)
    return x


if __name__ == "__main__":
    key = jax.random.PRNGKey(0)
    key_x1, key_x2, key_p = jax.random.split(key, 3)
    params = init_params(key_p)

    # Small-batch path: single 8-row tile, no padding to 256 zero rows.
    x_small = jax.random.normal(key_x1, (8, 1, 28, 28), jnp.float32)
    out_small = jax.block_until_ready(base_network_forward(x_small, params))
    ref_small = _reference_forward(x_small, params)
    assert out_small.shape == (8, NUM_CLASSES)
    assert jnp.allclose(out_small, ref_small, atol=2e-2, rtol=2e-2), \
        float(jnp.max(jnp.abs(out_small - ref_small)))

    # Multi-tile path: TB=256, grid=2 -> exercises the parallel batch grid.
    x_big = jax.random.normal(key_x2, (600, 1, 28, 28), jnp.float32)
    out_big = jax.block_until_ready(base_network_forward(x_big, params))
    ref_big = _reference_forward(x_big, params)
    assert out_big.shape == (600, NUM_CLASSES)
    assert jnp.allclose(out_big, ref_big, atol=2e-2, rtol=2e-2), \
        float(jnp.max(jnp.abs(out_big - ref_big)))

    print("KERNEL_OK")
</pallas_src>

<mosaic_0001>
module attributes {stable_mosaic.version = 11 : i64} {
  func.func @_mlp_kernel(%arg0: i32, %arg1: memref<8x784xf32, #tpu.memory_space<vmem>>, %arg2: memref<784x512xbf16, #tpu.memory_space<vmem>>, %arg3: memref<1x512xf32, #tpu.memory_space<vmem>>, %arg4: memref<512x256xbf16, #tpu.memory_space<vmem>>, %arg5: memref<1x256xf32, #tpu.memory_space<vmem>>, %arg6: memref<256x256xbf16, #tpu.memory_space<vmem>>, %arg7: memref<1x256xf32, #tpu.memory_space<vmem>>, %arg8: memref<256x128xbf16, #tpu.memory_space<vmem>>, %arg9: memref<1x128xf32, #tpu.memory_space<vmem>>, %arg10: memref<128x128xbf16, #tpu.memory_space<vmem>>, %arg11: memref<1x128xf32, #tpu.memory_space<vmem>>, %arg12: memref<8x128xf32, #tpu.memory_space<vmem>>) attributes {dimension_semantics = [#tpu.dimension_semantics<parallel>], iteration_bounds = array<i64: 1>, scalar_prefetch = 0 : i64, scratch_operands = 0 : i64, tpu.core_type = #tpu.core_type<tc>, window_params = [{transform_indices = @transform_0, window_bounds = array<i64: 8, 784>}, {pipeline_mode = #tpu.pipeline_mode<synchronous>, transform_indices = @transform_1, window_bounds = array<i64: 784, 512>}, {pipeline_mode = #tpu.pipeline_mode<synchronous>, transform_indices = @transform_2, window_bounds = array<i64: 1, 512>}, {pipeline_mode = #tpu.pipeline_mode<synchronous>, transform_indices = @transform_3, window_bounds = array<i64: 512, 256>}, {pipeline_mode = #tpu.pipeline_mode<synchronous>, transform_indices = @transform_4, window_bounds = array<i64: 1, 256>}, {pipeline_mode = #tpu.pipeline_mode<synchronous>, transform_indices = @transform_5, window_bounds = array<i64: 256, 256>}, {pipeline_mode = #tpu.pipeline_mode<synchronous>, transform_indices = @transform_6, window_bounds = array<i64: 1, 256>}, {pipeline_mode = #tpu.pipeline_mode<synchronous>, transform_indices = @transform_7, window_bounds = array<i64: 256, 128>}, {pipeline_mode = #tpu.pipeline_mode<synchronous>, transform_indices = @transform_8, window_bounds = array<i64: 1, 128>}, {pipeline_mode = #tpu.pipeline_mode<synchronous>, transform_indices = @transform_9, window_bounds = array<i64: 128, 128>}, {pipeline_mode = #tpu.pipeline_mode<synchronous>, transform_indices = @transform_10, window_bounds = array<i64: 1, 128>}, {transform_indices = @transform_11, window_bounds = array<i64: 8, 128>}]} {
    %c0 = arith.constant 0 : index
    %c0_0 = arith.constant 0 : index
    %0 = vector.load %arg1[%c0, %c0_0] : memref<8x784xf32, #tpu.memory_space<vmem>>, vector<8x784xf32>
    %1 = arith.truncf %0 : vector<8x784xf32> to vector<8x784xbf16>
    %c0_1 = arith.constant 0 : index
    %c0_2 = arith.constant 0 : index
    %2 = vector.load %arg2[%c0_1, %c0_2] : memref<784x512xbf16, #tpu.memory_space<vmem>>, vector<784x512xbf16>
    %cst = arith.constant dense<0.000000e+00> : vector<8x512xf32>
    %3 = tpu.matmul %1, %2, %cst {dimension_numbers = #tpu.dot_dimension_numbers<[1], [0], [0], [1], [0, 0, 1, 1], [], []>} : vector<8x784xbf16>, vector<784x512xbf16>, vector<8x512xf32> -> vector<8x512xf32>
    %c0_3 = arith.constant 0 : index
    %c0_4 = arith.constant 0 : index
    %4 = vector.load %arg3[%c0_3, %c0_4] : memref<1x512xf32, #tpu.memory_space<vmem>>, vector<1x512xf32>
    %5 = vector.broadcast %4 : vector<1x512xf32> to vector<8x512xf32>
    %6 = arith.addf %3, %5 : vector<8x512xf32>
    %cst_5 = arith.constant 0.000000e+00 : f32
    %7 = vector.broadcast %cst_5 : f32 to vector<8x512xf32>
    %8 = arith.maximumf %6, %7 : vector<8x512xf32>
    %9 = arith.truncf %8 : vector<8x512xf32> to vector<8x512xbf16>
    %c0_6 = arith.constant 0 : index
    %c0_7 = arith.constant 0 : index
    %10 = vector.load %arg4[%c0_6, %c0_7] : memref<512x256xbf16, #tpu.memory_space<vmem>>, vector<512x256xbf16>
    %cst_8 = arith.constant dense<0.000000e+00> : vector<8x256xf32>
    %11 = tpu.matmul %9, %10, %cst_8 {dimension_numbers = #tpu.dot_dimension_numbers<[1], [0], [0], [1], [0, 0, 1, 1], [], []>} : vector<8x512xbf16>, vector<512x256xbf16>, vector<8x256xf32> -> vector<8x256xf32>
    %c0_9 = arith.constant 0 : index
    %c0_10 = arith.constant 0 : index
    %12 = vector.load %arg5[%c0_9, %c0_10] : memref<1x256xf32, #tpu.memory_space<vmem>>, vector<1x256xf32>
    %13 = vector.broadcast %12 : vector<1x256xf32> to vector<8x256xf32>
    %14 = arith.addf %11, %13 : vector<8x256xf32>
    %cst_11 = arith.constant 0.000000e+00 : f32
    %15 = vector.broadcast %cst_11 : f32 to vector<8x256xf32>
    %16 = arith.maximumf %14, %15 : vector<8x256xf32>
    %17 = arith.truncf %16 : vector<8x256xf32> to vector<8x256xbf16>
    %c0_12 = arith.constant 0 : index
    %c0_13 = arith.constant 0 : index
    %18 = vector.load %arg6[%c0_12, %c0_13] : memref<256x256xbf16, #tpu.memory_space<vmem>>, vector<256x256xbf16>
    %cst_14 = arith.constant dense<0.000000e+00> : vector<8x256xf32>
    %19 = tpu.matmul %17, %18, %cst_14 {dimension_numbers = #tpu.dot_dimension_numbers<[1], [0], [0], [1], [0, 0, 1, 1], [], []>} : vector<8x256xbf16>, vector<256x256xbf16>, vector<8x256xf32> -> vector<8x256xf32>
    %c0_15 = arith.constant 0 : index
    %c0_16 = arith.constant 0 : index
    %20 = vector.load %arg7[%c0_15, %c0_16] : memref<1x256xf32, #tpu.memory_space<vmem>>, vector<1x256xf32>
    %21 = vector.broadcast %20 : vector<1x256xf32> to vector<8x256xf32>
    %22 = arith.addf %19, %21 : vector<8x256xf32>
    %cst_17 = arith.constant 0.000000e+00 : f32
    %23 = vector.broadcast %cst_17 : f32 to vector<8x256xf32>
    %24 = arith.maximumf %22, %23 : vector<8x256xf32>
    %25 = arith.truncf %24 : vector<8x256xf32> to vector<8x256xbf16>
    %c0_18 = arith.constant 0 : index
    %c0_19 = arith.constant 0 : index
    %26 = vector.load %arg8[%c0_18, %c0_19] : memref<256x128xbf16, #tpu.memory_space<vmem>>, vector<256x128xbf16>
    %cst_20 = arith.constant dense<0.000000e+00> : vector<8x128xf32>
    %27 = tpu.matmul %25, %26, %cst_20 {dimension_numbers = #tpu.dot_dimension_numbers<[1], [0], [0], [1], [0, 0, 1, 1], [], []>} : vector<8x256xbf16>, vector<256x128xbf16>, vector<8x128xf32> -> vector<8x128xf32>
    %c0_21 = arith.constant 0 : index
    %c0_22 = arith.constant 0 : index
    %28 = vector.load %arg9[%c0_21, %c0_22] : memref<1x128xf32, #tpu.memory_space<vmem>>, vector<1x128xf32>
    %29 = vector.broadcast %28 : vector<1x128xf32> to vector<8x128xf32>
    %30 = arith.addf %27, %29 : vector<8x128xf32>
    %cst_23 = arith.constant 0.000000e+00 : f32
    %31 = vector.broadcast %cst_23 : f32 to vector<8x128xf32>
    %32 = arith.maximumf %30, %31 : vector<8x128xf32>
    %33 = arith.truncf %32 : vector<8x128xf32> to vector<8x128xbf16>
    %c0_24 = arith.constant 0 : index
    %c0_25 = arith.constant 0 : index
    %34 = vector.load %arg10[%c0_24, %c0_25] : memref<128x128xbf16, #tpu.memory_space<vmem>>, vector<128x128xbf16>
    %cst_26 = arith.constant dense<0.000000e+00> : vector<8x128xf32>
    %35 = tpu.matmul %33, %34, %cst_26 {dimension_numbers = #tpu.dot_dimension_numbers<[1], [0], [0], [1], [0, 0, 1, 1], [], []>} : vector<8x128xbf16>, vector<128x128xbf16>, vector<8x128xf32> -> vector<8x128xf32>
    %c0_27 = arith.constant 0 : index
    %c0_28 = arith.constant 0 : index
    %36 = vector.load %arg11[%c0_27, %c0_28] : memref<1x128xf32, #tpu.memory_space<vmem>>, vector<1x128xf32>
    %37 = vector.broadcast %36 : vector<1x128xf32> to vector<8x128xf32>
    %38 = arith.addf %35, %37 : vector<8x128xf32>
    %c0_29 = arith.constant 0 : index
    %c0_30 = arith.constant 0 : index
    %39 = vector.load %arg12[%c0_29, %c0_30] : memref<8x128xf32, #tpu.memory_space<vmem>>, vector<8x128xf32>
    tpu.vector_store %arg12[%c0_29, %c0_30], %38 {strides = array<i32>} : memref<8x128xf32, #tpu.memory_space<vmem>>, vector<8x128xf32>,
    return
  }
  func.func @transform_0(%arg0: i32) -> (i32, i32) {
    %c0_i32 = arith.constant 0 : i32
    %c0_i32_0 = arith.constant 0 : i32
    return %arg0, %c0_i32 : i32, i32
  }
  func.func @transform_1(%arg0: i32) -> (i32, i32) {
    %c0_i32 = arith.constant 0 : i32
    %c0_i32_0 = arith.constant 0 : i32
    %c0_i32_1 = arith.constant 0 : i32
    return %c0_i32, %c0_i32_0 : i32, i32
  }
  func.func @transform_2(%arg0: i32) -> (i32, i32) {
    %c0_i32 = arith.constant 0 : i32
    %c0_i32_0 = arith.constant 0 : i32
    %c0_i32_1 = arith.constant 0 : i32
    return %c0_i32, %c0_i32_0 : i32, i32
  }
  func.func @transform_3(%arg0: i32) -> (i32, i32) {
    %c0_i32 = arith.constant 0 : i32
    %c0_i32_0 = arith.constant 0 : i32
    %c0_i32_1 = arith.constant 0 : i32
    return %c0_i32, %c0_i32_0 : i32, i32
  }
  func.func @transform_4(%arg0: i32) -> (i32, i32) {
    %c0_i32 = arith.constant 0 : i32
    %c0_i32_0 = arith.constant 0 : i32
    %c0_i32_1 = arith.constant 0 : i32
    return %c0_i32, %c0_i32_0 : i32, i32
  }
  func.func @transform_5(%arg0: i32) -> (i32, i32) {
    %c0_i32 = arith.constant 0 : i32
    %c0_i32_0 = arith.constant 0 : i32
    %c0_i32_1 = arith.constant 0 : i32
    return %c0_i32, %c0_i32_0 : i32, i32
  }
  func.func @transform_6(%arg0: i32) -> (i32, i32) {
    %c0_i32 = arith.constant 0 : i32
    %c0_i32_0 = arith.constant 0 : i32
    %c0_i32_1 = arith.constant 0 : i32
    return %c0_i32, %c0_i32_0 : i32, i32
  }
  func.func @transform_7(%arg0: i32) -> (i32, i32) {
    %c0_i32 = arith.constant 0 : i32
    %c0_i32_0 = arith.constant 0 : i32
    %c0_i32_1 = arith.constant 0 : i32
    return %c0_i32, %c0_i32_0 : i32, i32
  }
  func.func @transform_8(%arg0: i32) -> (i32, i32) {
    %c0_i32 = arith.constant 0 : i32
    %c0_i32_0 = arith.constant 0 : i32
    %c0_i32_1 = arith.constant 0 : i32
    return %c0_i32, %c0_i32_0 : i32, i32
  }
  func.func @transform_9(%arg0: i32) -> (i32, i32) {
    %c0_i32 = arith.constant 0 : i32
    %c0_i32_0 = arith.constant 0 : i32
    %c0_i32_1 = arith.constant 0 : i32
    return %c0_i32, %c0_i32_0 : i32, i32
  }
  func.func @transform_10(%arg0: i32) -> (i32, i32) {
    %c0_i32 = arith.constant 0 : i32
    %c0_i32_0 = arith.constant 0 : i32
    %c0_i32_1 = arith.constant 0 : i32
    return %c0_i32, %c0_i32_0 : i32, i32
  }
  func.func @transform_11(%arg0: i32) -> (i32, i32) {
    %c0_i32 = arith.constant 0 : i32
    %c0_i32_0 = arith.constant 0 : i32
    return %arg0, %c0_i32 : i32, i32
  }
}

</mosaic_0001>

<bundles_post_ra>
// kernel: base_network_forward.1
= control target key start
LH: loop header
LB: loop body
LE: loop exit
PB: predicated region body
PF: predicated region fallthrough
CT: control target
= control target key end

     0   :  { %vm1252_vm0 = vcmask 130048   ;;  %s4578_s0 = inlined_call_operand.vmem [shape: f32[8,784], index: 0, kind: input, shape index: {}]   ;;  %s4579_s1 = inlined_call_operand.vmem [shape: bf16[784,512], index: 1, kind: input, shape index: {}]   ;;  %s4580_s2 = inlined_call_operand.vmem [shape: f32[1,512], index: 2, kind: input, shape index: {}]   ;;  %s4581_s3 = inlined_call_operand.vmem [shape: bf16[512,256], index: 3, kind: input, shape index: {}]   ;;  %s4582_s4 = inlined_call_operand.vmem [shape: f32[1,256], index: 4, kind: input, shape index: {}]   ;;  %s4583_s5 = inlined_call_operand.vmem [shape: bf16[256,256], index: 5, kind: input, shape index: {}]   ;;  %s4584_s6 = inlined_call_operand.vmem [shape: f32[1,256], index: 6, kind: input, shape index: {}]   ;;  %s4585_s7 = inlined_call_operand.vmem [shape: bf16[256,128], index: 7, kind: input, shape index: {}]   ;;  %s4586_s8 = inlined_call_operand.vmem [shape: f32[1,128], index: 8, kind: input, shape index: {}]   ;;  %s4587_s9 = inlined_call_operand.vmem [shape: bf16[128,128], index: 9, kind: input, shape index: {}]   ;;  %s4588_s10 = inlined_call_operand.vmem [shape: f32[1,128], index: 10, kind: input, shape index: {}]   ;;  %s4589_s11 = inlined_call_operand.hbm [shape: f32[8,128], index: 11, kind: output, shape index: {}]  }
   0x1   :  { %v3001_v0 = vld [vmem:[%s4579_s1 + $0xe4] ss:$16 sps:$4 sm:$0xff]   ;;  %v3005_v2 = vld [vmem:[%s4579_s1 + $0xe0] ss:$16 sps:$4 sm:$0xff]   ;;  %v41_v46 = vld [vmem:[%s4578_s0 + $0x8] sm:$0xff] }
   0x2   :  { %v3003_v1 = vld [vmem:[%s4579_s1 + $0x2e4] ss:$16 sps:$4 sm:$0xff]   ;;  %1256 = vmatprep.subr.bf16.mxu0 %v3001_v0  ;;  %v3006_v3 = vld [vmem:[%s4579_s1 + $0x2e0] ss:$16 sps:$4 sm:$0xff]   ;;  %v3696_v49 = vpack.c.bf16 %v41_v46, %v41_v46  ;;  %v43_v50 = vld [vmem:[%s4578_s0 + $0x18] sm:$0xff] }
   0x3   :  { %1297 = vmatprep.subr.bf16.mxu1 %v3003_v1  ;;  %v3007_v4 = vld [vmem:[%s4579_s1 + $0xc4] ss:$16 sps:$4 sm:$0xff]   ;;  %1257 = vmatpush1.bf16.msra.mxu0 %v3005_v2  ;;  %v3011_v6 = vld [vmem:[%s4579_s1 + $0xc0] ss:$16 sps:$4 sm:$0xff]   ;;  %v3704_v52 = vpack.c.bf16 %v43_v50, %v43_v50 }
   0x4   :  { %1298 = vmatpush1.bf16.msra.mxu1 %v3006_v3  ;;  %v3009_v5 = vld [vmem:[%s4579_s1 + $0x2c4] ss:$16 sps:$4 sm:$0xff]   ;;  %1258 = vmatprep.subr.bf16.mxu0 %v3007_v4  ;;  %v3012_v7 = vld [vmem:[%s4579_s1 + $0x2c0] ss:$16 sps:$4 sm:$0xff]  }
   0x5   :  { %1299 = vmatprep.subr.bf16.mxu1 %v3009_v5  ;;  %v3013_v8 = vld [vmem:[%s4579_s1 + $0xa4] ss:$16 sps:$4 sm:$0xff]   ;;  %v3017_v10 = vld [vmem:[%s4579_s1 + $0xa0] ss:$16 sps:$4 sm:$0xff]   ;;  %1288 = vmatprep.mubr.bf16.mxu0 %v3696_v49 }
   0x6   :  { %v3015_v9 = vld [vmem:[%s4579_s1 + $0x2a4] ss:$16 sps:$4 sm:$0xff]   ;;  %v3018_v11 = vld [vmem:[%s4579_s1 + $0x2a0] ss:$16 sps:$4 sm:$0xff]   ;;  %1329 = vmatprep.mubr.bf16.mxu1 %v3704_v52 }
   0x7   :  { %1259 = vmatpush1.bf16.msra.mxu0 %v3011_v6  ;;  %v3019_v12 = vld [vmem:[%s4579_s1 + $0x84] ss:$16 sps:$4 sm:$0xff]   ;;  %v3023_v14 = vld [vmem:[%s4579_s1 + $0x80] ss:$16 sps:$4 sm:$0xff]  }
   0x8   :  { %1300 = vmatpush1.bf16.msra.mxu1 %v3012_v7  ;;  %1260 = vmatprep.subr.bf16.mxu0 %v3013_v8  ;;  %v3021_v13 = vld [vmem:[%s4579_s1 + $0x284] ss:$16 sps:$4 sm:$0xff]   ;;  %v3024_v15 = vld [vmem:[%s4579_s1 + $0x280] ss:$16 sps:$4 sm:$0xff]  }
   0x9   :  { %1301 = vmatprep.subr.bf16.mxu1 %v3015_v9  ;;  %v3025_v16 = vld [vmem:[%s4579_s1 + $0x64] ss:$16 sps:$4 sm:$0xff]   ;;  %v3029_v18 = vld [vmem:[%s4579_s1 + $0x60] ss:$16 sps:$4 sm:$0xff]  }
   0xa   :  { %v3027_v17 = vld [vmem:[%s4579_s1 + $0x264] ss:$16 sps:$4 sm:$0xff]   ;;  %v3030_v19 = vld [vmem:[%s4579_s1 + $0x260] ss:$16 sps:$4 sm:$0xff]  }
   0xb   :  { %1261 = vmatpush1.bf16.msra.mxu0 %v3017_v10  ;;  %v3031_v20 = vld [vmem:[%s4579_s1 + $0x44] ss:$16 sps:$4 sm:$0xff]   ;;  %v3035_v22 = vld [vmem:[%s4579_s1 + $0x40] ss:$16 sps:$4 sm:$0xff]  }
   0xc   :  { %1302 = vmatpush1.bf16.msra.mxu1 %v3018_v11  ;;  %1262 = vmatprep.subr.bf16.mxu0 %v3019_v12  ;;  %v3033_v21 = vld [vmem:[%s4579_s1 + $0x244] ss:$16 sps:$4 sm:$0xff]   ;;  %v3036_v23 = vld [vmem:[%s4579_s1 + $0x240] ss:$16 sps:$4 sm:$0xff]  }
   0xd   :  { %1303 = vmatprep.subr.bf16.mxu1 %v3021_v13  ;;  %v3037_v24 = vld [vmem:[%s4579_s1 + $0x24] ss:$16 sps:$4 sm:$0xff]   ;;  %v3041_v26 = vld [vmem:[%s4579_s1 + $0x20] ss:$16 sps:$4 sm:$0xff]   ;;  %v3108_v13 = vld [vmem:[%s4579_s1 + $0xec] ss:$16 sps:$4 sm:$0xff]  }
   0xe   :  { %v3039_v25 = vld [vmem:[%s4579_s1 + $0x224] ss:$16 sps:$4 sm:$0xff]   ;;  %v3042_v27 = vld [vmem:[%s4579_s1 + $0x220] ss:$16 sps:$4 sm:$0xff]  }
   0xf   :  { %1263 = vmatpush1.bf16.msra.mxu0 %v3023_v14  ;;  %v3043_v28 = vld [vmem:[%s4579_s1 + $0x4] ss:$16 sps:$4 sm:$0xff]   ;;  %v3047_v30 = vld [vmem:[%s4579_s1] ss:$16 sps:$4 sm:$0xff]  }
  0x10   :  { %1304 = vmatpush1.bf16.msra.mxu1 %v3024_v15  ;;  %1264 = vmatprep.subr.bf16.mxu0 %v3025_v16  ;;  %v3045_v29 = vld [vmem:[%s4579_s1 + $0x204] ss:$16 sps:$4 sm:$0xff]   ;;  %v3048_v31 = vld [vmem:[%s4579_s1 + $0x200] ss:$16 sps:$4 sm:$0xff]   ;;  %v3485_v16 = vmov 0  }
  0x11   :  { %1305 = vmatprep.subr.bf16.mxu1 %v3027_v17  ;;  %v3049_v32 = vld [vmem:[%s4579_s1 + $0x1e4] ss:$16 sps:$4 sm:$0xff]   ;;  %v3053_v34 = vld [vmem:[%s4579_s1 + $0x1e0] ss:$16 sps:$4 sm:$0xff]  }
  0x12   :  { %v3051_v33 = vld [vmem:[%s4579_s1 + $0x3e4] ss:$16 sps:$4 sm:$0xff]   ;;  %v3054_v35 = vld [vmem:[%s4579_s1 + $0x3e0] ss:$16 sps:$4 sm:$0xff]  }
  0x13   :  { %1265 = vmatpush1.bf16.msra.mxu0 %v3029_v18  ;;  %v3055_v36 = vld [vmem:[%s4579_s1 + $0x1c4] ss:$16 sps:$4 sm:$0xff]   ;;  %v3059_v38 = vld [vmem:[%s4579_s1 + $0x1c0] ss:$16 sps:$4 sm:$0xff]   ;;  %v3106_v18 = vld [vmem:[%s4579_s1 + $0xe8] ss:$16 sps:$4 sm:$0xff]  }
  0x14   :  { %1306 = vmatpush1.bf16.msra.mxu1 %v3030_v19  ;;  %1266 = vmatprep.subr.bf16.mxu0 %v3031_v20  ;;  %v3057_v37 = vld [vmem:[%s4579_s1 + $0x3c4] ss:$16 sps:$4 sm:$0xff]   ;;  %v3060_v39 = vld [vmem:[%s4579_s1 + $0x3c0] ss:$16 sps:$4 sm:$0xff]  }
  0x15   :  { %1307 = vmatprep.subr.bf16.mxu1 %v3033_v21  ;;  %v3061_v40 = vld [vmem:[%s4579_s1 + $0x1a4] ss:$16 sps:$4 sm:$0xff]   ;;  %v3065_v42 = vld [vmem:[%s4579_s1 + $0x1a0] ss:$16 sps:$4 sm:$0xff]   ;;  %v3114_v21 = vld [vmem:[%s4579_s1 + $0xcc] ss:$16 sps:$4 sm:$0xff]  }
  0x16   :  { %v3063_v41 = vld [vmem:[%s4579_s1 + $0x3a4] ss:$16 sps:$4 sm:$0xff]   ;;  %v3066_v43 = vld [vmem:[%s4579_s1 + $0x3a0] ss:$16 sps:$4 sm:$0xff]  }
  0x17   :  { %1267 = vmatpush1.bf16.msra.mxu0 %v3035_v22  ;;  %v3067_v44 = vld [vmem:[%s4579_s1 + $0x184] ss:$16 sps:$4 sm:$0xff]   ;;  %v3071_v47 = vld [vmem:[%s4579_s1 + $0x180] ss:$16 sps:$4 sm:$0xff]  }
  0x18   :  { %1308 = vmatpush1.bf16.msra.mxu1 %v3036_v23  ;;  %1268 = vmatprep.subr.bf16.mxu0 %v3037_v24  ;;  %v3069_v45 = vld [vmem:[%s4579_s1 + $0x384] ss:$16 sps:$4 sm:$0xff]   ;;  %v3072_v48 = vld [vmem:[%s4579_s1 + $0x380] ss:$16 sps:$4 sm:$0xff]   ;;  %v3112_v23 = vld [vmem:[%s4579_s1 + $0xc8] ss:$16 sps:$4 sm:$0xff]  }
  0x19   :  { %1309 = vmatprep.subr.bf16.mxu1 %v3039_v25  ;;  %v3073_v51 = vld [vmem:[%s4579_s1 + $0x164] ss:$16 sps:$4 sm:$0xff]   ;;  %v3077_v54 = vld [vmem:[%s4579_s1 + $0x160] ss:$16 sps:$4 sm:$0xff]   ;;  %v3120_v25 = vld [vmem:[%s4579_s1 + $0xac] ss:$16 sps:$4 sm:$0xff]  }
  0x1a   :  { %v3075_v53 = vld [vmem:[%s4579_s1 + $0x364] ss:$16 sps:$4 sm:$0xff]   ;;  %v3078_v55 = vld [vmem:[%s4579_s1 + $0x360] ss:$16 sps:$4 sm:$0xff]  }
  0x1b   :  { %1269 = vmatpush1.bf16.msra.mxu0 %v3041_v26  ;;  %v3079_v56 = vld [vmem:[%s4579_s1 + $0x144] ss:$16 sps:$4 sm:$0xff]   ;;  %v3083_v58 = vld [vmem:[%s4579_s1 + $0x140] ss:$16 sps:$4 sm:$0xff]  }
  0x1c   :  { %1310 = vmatpush1.bf16.msra.mxu1 %v3042_v27  ;;  %1270 = vmatprep.subr.bf16.mxu0 %v3043_v28  ;;  %v3081_v57 = vld [vmem:[%s4579_s1 + $0x344] ss:$16 sps:$4 sm:$0xff]   ;;  %v3084_v59 = vld [vmem:[%s4579_s1 + $0x340] ss:$16 sps:$4 sm:$0xff]   ;;  %v3118_v27 = vld [vmem:[%s4579_s1 + $0xa8] ss:$16 sps:$4 sm:$0xff]  }
  0x1d   :  { %1311 = vmatprep.subr.bf16.mxu1 %v3045_v29  ;;  %v3085_v60 = vld [vmem:[%s4579_s1 + $0x124] ss:$16 sps:$4 sm:$0xff]   ;;  %v3089_v62 = vld [vmem:[%s4579_s1 + $0x120] ss:$16 sps:$4 sm:$0xff]   ;;  %v3126_v29 = vld [vmem:[%s4579_s1 + $0x8c] ss:$16 sps:$4 sm:$0xff]  }
  0x1e   :  { %v3087_v61 = vld [vmem:[%s4579_s1 + $0x324] ss:$16 sps:$4 sm:$0xff]   ;;  %v3090_v63 = vld [vmem:[%s4579_s1 + $0x320] ss:$16 sps:$4 sm:$0xff]  }
  0x1f   :  { %1271 = vmatpush1.bf16.msra.mxu0 %v3047_v30  ;;  %v3091_v0 = vld [vmem:[%s4579_s1 + $0x104] ss:$16 sps:$4 sm:$0xff]   ;;  %v3095_v2 = vld [vmem:[%s4579_s1 + $0x100] ss:$16 sps:$4 sm:$0xff]  }
  0x20   :  { %1312 = vmatpush1.bf16.msra.mxu1 %v3048_v31  ;;  %1272 = vmatprep.subr.bf16.mxu0 %v3049_v32  ;;  %v3093_v1 = vld [vmem:[%s4579_s1 + $0x304] ss:$16 sps:$4 sm:$0xff]   ;;  %v3096_v3 = vld [vmem:[%s4579_s1 + $0x300] ss:$16 sps:$4 sm:$0xff]   ;;  %v3124_v31 = vld [vmem:[%s4579_s1 + $0x88] ss:$16 sps:$4 sm:$0xff]  }
  0x21   :  { %1313 = vmatprep.subr.bf16.mxu1 %v3051_v33  ;;  %v40_v4 = vld [vmem:[%s4578_s0] sm:$0xff]  ;;  %v42_v5 = vld [vmem:[%s4578_s0 + $0x10] sm:$0xff]  ;;  %v3132_v33 = vld [vmem:[%s4579_s1 + $0x6c] ss:$16 sps:$4 sm:$0xff]  }
  0x22   :  { %v3099_v6 = vld [vmem:[%s4579_s1 + $0x4e4] ss:$16 sps:$4 sm:$0xff]   ;;  %v3765_v8 = vpack.c.bf16 %v40_v4, %v40_v4  ;;  %v3767_v9 = vpack.c.bf16 %v42_v5, %v42_v5  ;;  %v3097_v10 = vld [vmem:[%s4579_s1 + $0x4e0] ss:$16 sps:$4 sm:$0xff]   ;;  %v3180_v4 = vld [vmem:[%s4579_s1 + $0x16c] ss:$16 sps:$4 sm:$0xff]  }
  0x23   :  { %1273 = vmatpush2.bf16.msra.mxu0 %v3053_v34  ;;  %v3102_v7 = vld [vmem:[%s4579_s1 + $0x604] ss:$16 sps:$4 sm:$0xff]   ;;  %v3100_v11 = vld [vmem:[%s4579_s1 + $0x600] ss:$16 sps:$4 sm:$0xff]  }
  0x24   :  { %1314 = vmatpush2.bf16.msra.mxu1 %v3054_v35  ;;  %1274 = vmatprep.subr.bf16.mxu0 %v3055_v36  ;;  %v3105_v12 = vld [vmem:[%s4579_s1 + $0x4c4] ss:$16 sps:$4 sm:$0xff]   ;;  %v3103_v14 = vld [vmem:[%s4579_s1 + $0x4c0] ss:$16 sps:$4 sm:$0xff]   ;;  %v45_v35 = vld [vmem:[%s4578_s0 + $0x28] sm:$0xff] }
  0x25   :  { %1315 = vmatprep.subr.bf16.mxu1 %v3057_v37  ;;  %v46_v15 = vld [vmem:[%s4578_s0 + $0x30] sm:$0xff]  ;;  %v3849_v36 = vpack.c.bf16 %v45_v35, %v45_v35  ;;  %v3130_v37 = vld [vmem:[%s4579_s1 + $0x68] ss:$16 sps:$4 sm:$0xff]  }
  0x26   :  { %v3111_v17 = vld [vmem:[%s4579_s1 + $0x4a4] ss:$16 sps:$4 sm:$0xff]   ;;  %v3796_v19 = vpack.c.bf16 %v46_v15, %v46_v15  ;;  %v3109_v20 = vld [vmem:[%s4579_s1 + $0x4a0] ss:$16 sps:$4 sm:$0xff]   ;;  %v3214_v35 = vld [vmem:[%s4579_s1 + $0x4a8] ss:$16 sps:$4 sm:$0xff]  }
  0x27   :  { %1275 = vmatpush2.bf16.msra.mxu0 %v3059_v38  ;;  %v3117_v22 = vld [vmem:[%s4579_s1 + $0x484] ss:$16 sps:$4 sm:$0xff]   ;;  %v3115_v24 = vld [vmem:[%s4579_s1 + $0x480] ss:$16 sps:$4 sm:$0xff]  }
  0x28   :  { %1316 = vmatpush2.bf16.msra.mxu1 %v3060_v39  ;;  %1276 = vmatprep.subr.bf16.mxu0 %v3061_v40  ;;  %v3123_v26 = vld [vmem:[%s4579_s1 + $0x464] ss:$16 sps:$4 sm:$0xff]   ;;  %v3121_v28 = vld [vmem:[%s4579_s1 + $0x460] ss:$16 sps:$4 sm:$0xff]   ;;  %v3138_v39 = vld [vmem:[%s4579_s1 + $0x4c] ss:$16 sps:$4 sm:$0xff]  }
  0x29   :  { %1317 = vmatprep.subr.bf16.mxu1 %v3063_v41  ;;  %v3129_v30 = vld [vmem:[%s4579_s1 + $0x444] ss:$16 sps:$4 sm:$0xff]   ;;  %v3127_v32 = vld [vmem:[%s4579_s1 + $0x440] ss:$16 sps:$4 sm:$0xff]   ;;  %v3136_v41 = vld [vmem:[%s4579_s1 + $0x48] ss:$16 sps:$4 sm:$0xff]  }
  0x2a   :  { %v3135_v34 = vld [vmem:[%s4579_s1 + $0x424] ss:$16 sps:$4 sm:$0xff]   ;;  %v3133_v38 = vld [vmem:[%s4579_s1 + $0x420] ss:$16 sps:$4 sm:$0xff]  }
  0x2b   :  { %1277 = vmatpush2.bf16.msra.mxu0 %v3065_v42  ;;  %v3141_v40 = vld [vmem:[%s4579_s1 + $0x404] ss:$16 sps:$4 sm:$0xff]   ;;  %v3139_v42 = vld [vmem:[%s4579_s1 + $0x400] ss:$16 sps:$4 sm:$0xff]  }
  0x2c   :  { %1318 = vmatpush2.bf16.msra.mxu1 %v3066_v43  ;;  %1278 = vmatprep.subr.bf16.mxu0 %v3067_v44  ;;  %v3144_v43 = vld [vmem:[%s4579_s1 + $0x2c] ss:$16 sps:$4 sm:$0xff]   ;;  %v3147_v44 = vld [vmem:[%s4579_s1 + $0x5e4] ss:$16 sps:$4 sm:$0xff]   ;;  %v3145_v46 = vld [vmem:[%s4579_s1 + $0x5e0] ss:$16 sps:$4 sm:$0xff]  }
  0x2d   :  { %1319 = vmatprep.subr.bf16.mxu1 %v3069_v45  ;;  %v3142_v45 = vld [vmem:[%s4579_s1 + $0x28] ss:$16 sps:$4 sm:$0xff]   ;;  %v3151_v50 = vld [vmem:[%s4579_s1 + $0x5c0] ss:$16 sps:$4 sm:$0xff]   ;;  %v3183_v5 = vld [vmem:[%s4579_s1 + $0x524] ss:$16 sps:$4 sm:$0xff]  }
  0x2e   :  { %v44_v15 = vld [vmem:[%s4578_s0 + $0x20] sm:$0xff] }
  0x2f   :  { %1279 = vmatpush2.bf16.msra.mxu0 %v3071_v47  ;;  %v3150_v47 = vld [vmem:[%s4579_s1 + $0xc] ss:$16 sps:$4 sm:$0xff]  }
  0x30   :  { %1320 = vmatpush2.bf16.msra.mxu1 %v3072_v48  ;;  %1280 = vmatprep.subr.bf16.mxu0 %v3073_v51  ;;  %v3153_v48 = vld [vmem:[%s4579_s1 + $0x5c4] ss:$16 sps:$4 sm:$0xff]   ;;  %v3156_v51 = vld [vmem:[%s4579_s1 + $0x1ec] ss:$16 sps:$4 sm:$0xff]  }
  0x31   :  { %1321 = vmatprep.subr.bf16.mxu1 %v3075_v53  ;;  %v3159_v53 = vld [vmem:[%s4579_s1 + $0x5a4] ss:$16 sps:$4 sm:$0xff]  }
  0x33   :  { %1281 = vmatpush2.bf16.msra.mxu0 %v3077_v54  ;;  %v3154_v54 = vld [vmem:[%s4579_s1 + $0x1e8] ss:$16 sps:$4 sm:$0xff]  }
  0x34   :  { %1322 = vmatpush2.bf16.msra.mxu1 %v3078_v55  ;;  %1282 = vmatprep.subr.bf16.mxu0 %v3079_v56  ;;  %v3157_v55 = vld [vmem:[%s4579_s1 + $0x5a0] ss:$16 sps:$4 sm:$0xff]   ;;  %v3162_v56 = vld [vmem:[%s4579_s1 + $0x1cc] ss:$16 sps:$4 sm:$0xff]  }
  0x35   :  { %1323 = vmatprep.subr.bf16.mxu1 %v3081_v57  ;;  %v3165_v57 = vld [vmem:[%s4579_s1 + $0x584] ss:$16 sps:$4 sm:$0xff]  }
  0x37   :  { %1283 = vmatpush2.bf16.msra.mxu0 %v3083_v58  ;;  %v3160_v58 = vld [vmem:[%s4579_s1 + $0x1c8] ss:$16 sps:$4 sm:$0xff]  }
  0x38   :  { %1324 = vmatpush2.bf16.msra.mxu1 %v3084_v59  ;;  %1284 = vmatprep.subr.bf16.mxu0 %v3085_v60  ;;  %v3163_v59 = vld [vmem:[%s4579_s1 + $0x580] ss:$16 sps:$4 sm:$0xff]   ;;  %v3168_v60 = vld [vmem:[%s4579_s1 + $0x1ac] ss:$16 sps:$4 sm:$0xff]  }
  0x39   :  { %1325 = vmatprep.subr.bf16.mxu1 %v3087_v61  ;;  %v3171_v61 = vld [vmem:[%s4579_s1 + $0x564] ss:$16 sps:$4 sm:$0xff]  }
  0x3b   :  { %1285 = vmatpush2.bf16.msra.mxu0 %v3089_v62  ;;  %v3166_v62 = vld [vmem:[%s4579_s1 + $0x1a8] ss:$16 sps:$4 sm:$0xff]  }
  0x3c   :  { %1326 = vmatpush2.bf16.msra.mxu1 %v3090_v63  ;;  %1286 = vmatprep.subr.bf16.mxu0 %v3091_v0  ;;  %v3169_v63 = vld [vmem:[%s4579_s1 + $0x560] ss:$16 sps:$4 sm:$0xff]   ;;  %v3174_v0 = vld [vmem:[%s4579_s1 + $0x18c] ss:$16 sps:$4 sm:$0xff]  }
  0x3d   :  { %1327 = vmatprep.subr.bf16.mxu1 %v3093_v1  ;;  %v3177_v1 = vld [vmem:[%s4579_s1 + $0x544] ss:$16 sps:$4 sm:$0xff]  }
  0x3f   :  { %1287 = vmatpush2.bf16.msra.mxu0 %v3095_v2  ;;  %v3172_v2 = vld [vmem:[%s4579_s1 + $0x188] ss:$16 sps:$4 sm:$0xff]  }
  0x40   :  { %1328 = vmatpush2.bf16.msra.mxu1 %v3096_v3  ;;  %1338 = vmatprep.subr.bf16.mxu0 %v3099_v6  ;;  %v3175_v3 = vld [vmem:[%s4579_s1 + $0x540] ss:$16 sps:$4 sm:$0xff]   ;;  %v3178_v6 = vld [vmem:[%s4579_s1 + $0x168] ss:$16 sps:$4 sm:$0xff]  }
  0x41   :  { %1393 = vmatprep.subr.bf16.mxu1 %v3102_v7  ;;  %v3181_v7 = vld [vmem:[%s4579_s1 + $0x520] ss:$16 sps:$4 sm:$0xff]  }
  0x42   :  { %1289 = vmatmul.mubr.bf16.vlgmr.msra.gmra.mxu0 %v3765_v8 }
  0x43   :  { %1330 = vmatmul.mubr.bf16.vlgmr.msra.gmra.mxu1 %v3767_v9  ;;  %1339 = vmatpush1.bf16.msra.mxu0 %v3097_v10  ;;  %v3186_v10 = vld [vmem:[%s4579_s1 + $0x14c] ss:$16 sps:$4 sm:$0xff]  }
  0x44   :  { %1394 = vmatpush1.bf16.msra.mxu1 %v3100_v11  ;;  %1340 = vmatprep.subr.bf16.mxu0 %v3105_v12  ;;  %v3189_v11 = vld [vmem:[%s4579_s1 + $0x504] ss:$16 sps:$4 sm:$0xff]   ;;  %v3184_v12 = vld [vmem:[%s4579_s1 + $0x148] ss:$16 sps:$4 sm:$0xff]  }
  0x45   :  { %1411 = vmatprep.mubr.bf16.mxu1 %v3485_v16  ;;  %1420 = vmatprep.subr.bf16.mxu1 %v3108_v13  ;;  %v3187_v13 = vld [vmem:[%s4579_s1 + $0x500] ss:$16 sps:$4 sm:$0xff]  }
  0x46   :  { %1370 = vmatprep.mubr.bf16.mxu0 %v3849_v36 }
  0x47   :  { %1341 = vmatpush1.bf16.msra.mxu0 %v3103_v14  ;;  %v3192_v14 = vld [vmem:[%s4579_s1 + $0x12c] ss:$16 sps:$4 sm:$0xff]  }
  0x48   :  { %1342 = vmatprep.subr.bf16.mxu0 %v3111_v17  ;;  %v3195_v17 = vld [vmem:[%s4579_s1 + $0x2ec] ss:$16 sps:$4 sm:$0xff]  }
  0x4b   :  { %2822 = vmatmul.mubr.msk.bf16.vlgmr.msra.gmra.mxu1 %vm1252_vm0, %v3796_v19  ;;  %1343 = vmatpush1.bf16.msra.mxu0 %v3109_v20  ;;  %v3978_v20 = vpack.c.bf16 %v44_v15, %v44_v15  ;;  %v3282_v15 = vld [vmem:[%s4579_s1 + $0x54c] ss:$16 sps:$4 sm:$0xff]  }
  0x4c   :  { %1421 = vmatpush1.bf16.msra.mxu1 %v3106_v18  ;;  %1344 = vmatprep.subr.bf16.mxu0 %v3117_v22  ;;  %v3190_v18 = vld [vmem:[%s4579_s1 + $0x128] ss:$16 sps:$4 sm:$0xff]   ;;  %v3198_v22 = vld [vmem:[%s4579_s1 + $0x10c] ss:$16 sps:$4 sm:$0xff]  }
  0x4d   :  { %1422 = vmatprep.subr.bf16.mxu1 %v3114_v21  ;;  %1452 = vmatprep.mubr.bf16.mxu1 %v3696_v49  ;;  %v3148_v49 = vld [vmem:[%s4579_s1 + $0x8] ss:$16 sps:$4 sm:$0xff]  }
  0x4e   :  { %v3193_v21 = vld [vmem:[%s4579_s1 + $0x2e8] ss:$16 sps:$4 sm:$0xff]  }
  0x4f   :  { %1345 = vmatpush1.bf16.msra.mxu0 %v3115_v24  ;;  %v3196_v24 = vld [vmem:[%s4579_s1 + $0x108] ss:$16 sps:$4 sm:$0xff]  }
  0x50   :  { %1423 = vmatpush1.bf16.msra.mxu1 %v3112_v23  ;;  %1346 = vmatprep.subr.bf16.mxu0 %v3123_v26  ;;  %v3201_v23 = vld [vmem:[%s4579_s1 + $0x2cc] ss:$16 sps:$4 sm:$0xff]  }
  0x51   :  { %1424 = vmatprep.subr.bf16.mxu1 %v3120_v25  ;;  %v3199_v25 = vld [vmem:[%s4579_s1 + $0x2c8] ss:$16 sps:$4 sm:$0xff]   ;;  %v3204_v26 = vld [vmem:[%s4579_s1 + $0x4ec] ss:$16 sps:$4 sm:$0xff]  }
  0x53   :  { %1347 = vmatpush1.bf16.msra.mxu0 %v3121_v28  ;;  %v3202_v28 = vld [vmem:[%s4579_s1 + $0x4e8] ss:$16 sps:$4 sm:$0xff]  }
  0x54   :  { %1425 = vmatpush1.bf16.msra.mxu1 %v3118_v27  ;;  %1348 = vmatprep.subr.bf16.mxu0 %v3129_v30  ;;  %v3207_v27 = vld [vmem:[%s4579_s1 + $0x2ac] ss:$16 sps:$4 sm:$0xff]  }
  0x55   :  { %1426 = vmatprep.subr.bf16.mxu1 %v3126_v29  ;;  %v3205_v29 = vld [vmem:[%s4579_s1 + $0x2a8] ss:$16 sps:$4 sm:$0xff]   ;;  %v3210_v30 = vld [vmem:[%s4579_s1 + $0x4cc] ss:$16 sps:$4 sm:$0xff]  }
  0x57   :  { %1349 = vmatpush1.bf16.msra.mxu0 %v3127_v32  ;;  %v3208_v32 = vld [vmem:[%s4579_s1 + $0x4c8] ss:$16 sps:$4 sm:$0xff]  }
  0x58   :  { %1427 = vmatpush1.bf16.msra.mxu1 %v3124_v31  ;;  %1350 = vmatprep.subr.bf16.mxu0 %v3135_v34  ;;  %v3213_v31 = vld [vmem:[%s4579_s1 + $0x28c] ss:$16 sps:$4 sm:$0xff]  }
  0x59   :  { %1428 = vmatprep.subr.bf16.mxu1 %v3132_v33  ;;  %v3216_v33 = vld [vmem:[%s4579_s1 + $0x4ac] ss:$16 sps:$4 sm:$0xff]  }
  0x5a   :  { %v3219_v34 = vld [vmem:[%s4579_s1 + $0x26c] ss:$16 sps:$4 sm:$0xff]  }
  0x5b   :  { %1351 = vmatpush1.bf16.msra.mxu0 %v3133_v38  ;;  %v3225_v38 = vld [vmem:[%s4579_s1 + $0x24c] ss:$16 sps:$4 sm:$0xff]  }
  0x5c   :  { %1429 = vmatpush1.bf16.msra.mxu1 %v3130_v37  ;;  %1352 = vmatprep.subr.bf16.mxu0 %v3141_v40  ;;  %v3222_v37 = vld [vmem:[%s4579_s1 + $0x48c] ss:$16 sps:$4 sm:$0xff]  }
  0x5d   :  { %1430 = vmatprep.subr.bf16.mxu1 %v3138_v39  ;;  %v3223_v39 = vld [vmem:[%s4579_s1 + $0x248] ss:$16 sps:$4 sm:$0xff]   ;;  %v3228_v40 = vld [vmem:[%s4579_s1 + $0x46c] ss:$16 sps:$4 sm:$0xff]  }
  0x5f   :  { %1353 = vmatpush1.bf16.msra.mxu0 %v3139_v42  ;;  %v3226_v42 = vld [vmem:[%s4579_s1 + $0x468] ss:$16 sps:$4 sm:$0xff]  }
  0x60   :  { %1431 = vmatpush1.bf16.msra.mxu1 %v3136_v41  ;;  %1354 = vmatprep.subr.bf16.mxu0 %v3147_v44  ;;  %v3231_v41 = vld [vmem:[%s4579_s1 + $0x22c] ss:$16 sps:$4 sm:$0xff]  }
  0x61   :  { %1432 = vmatprep.subr.bf16.mxu1 %v3144_v43  ;;  %v3229_v43 = vld [vmem:[%s4579_s1 + $0x228] ss:$16 sps:$4 sm:$0xff]   ;;  %v3234_v44 = vld [vmem:[%s4579_s1 + $0x44c] ss:$16 sps:$4 sm:$0xff]  }
  0x63   :  { %1355 = vmatpush2.bf16.msra.mxu0 %v3145_v46  ;;  %v3232_v46 = vld [vmem:[%s4579_s1 + $0x448] ss:$16 sps:$4 sm:$0xff]  }
  0x64   :  { %1433 = vmatpush1.bf16.msra.mxu1 %v3142_v45  ;;  %1356 = vmatprep.subr.bf16.mxu0 %v3153_v48  ;;  %v3237_v45 = vld [vmem:[%s4579_s1 + $0x20c] ss:$16 sps:$4 sm:$0xff]  }
  0x65   :  { %1434 = vmatprep.subr.bf16.mxu1 %v3150_v47  ;;  %v3235_v47 = vld [vmem:[%s4579_s1 + $0x208] ss:$16 sps:$4 sm:$0xff]   ;;  %v3240_v48 = vld [vmem:[%s4579_s1 + $0x42c] ss:$16 sps:$4 sm:$0xff]  }
  0x67   :  { %1357 = vmatpush2.bf16.msra.mxu0 %v3151_v50  ;;  %v3238_v50 = vld [vmem:[%s4579_s1 + $0x428] ss:$16 sps:$4 sm:$0xff]  }
  0x68   :  { %1435 = vmatpush1.bf16.msra.mxu1 %v3148_v49  ;;  %1358 = vmatprep.subr.bf16.mxu0 %v3159_v53  ;;  %v3243_v49 = vld [vmem:[%s4579_s1 + $0x3ec] ss:$16 sps:$4 sm:$0xff]  }
  0x69   :  { %1436 = vmatprep.subr.bf16.mxu1 %v3156_v51  ;;  %v3241_v51 = vld [vmem:[%s4579_s1 + $0x3e8] ss:$16 sps:$4 sm:$0xff]   ;;  %v3246_v53 = vld [vmem:[%s4579_s1 + $0x40c] ss:$16 sps:$4 sm:$0xff]  }
  0x6b   :  { %1359 = vmatpush2.bf16.msra.mxu0 %v3157_v55  ;;  %v3244_v55 = vld [vmem:[%s4579_s1 + $0x408] ss:$16 sps:$4 sm:$0xff]  }
  0x6c   :  { %1437 = vmatpush2.bf16.msra.mxu1 %v3154_v54  ;;  %1360 = vmatprep.subr.bf16.mxu0 %v3165_v57  ;;  %v3249_v54 = vld [vmem:[%s4579_s1 + $0x3cc] ss:$16 sps:$4 sm:$0xff]  }
  0x6d   :  { %1438 = vmatprep.subr.bf16.mxu1 %v3162_v56  ;;  %v3247_v56 = vld [vmem:[%s4579_s1 + $0x3c8] ss:$16 sps:$4 sm:$0xff]   ;;  %v3252_v57 = vld [vmem:[%s4579_s1 + $0x5ec] ss:$16 sps:$4 sm:$0xff]  }
  0x6f   :  { %1361 = vmatpush2.bf16.msra.mxu0 %v3163_v59  ;;  %v3250_v59 = vld [vmem:[%s4579_s1 + $0x5e8] ss:$16 sps:$4 sm:$0xff]  }
  0x70   :  { %1439 = vmatpush2.bf16.msra.mxu1 %v3160_v58  ;;  %1362 = vmatprep.subr.bf16.mxu0 %v3171_v61  ;;  %v3255_v58 = vld [vmem:[%s4579_s1 + $0x3ac] ss:$16 sps:$4 sm:$0xff]  }
  0x71   :  { %1440 = vmatprep.subr.bf16.mxu1 %v3168_v60  ;;  %v3253_v60 = vld [vmem:[%s4579_s1 + $0x3a8] ss:$16 sps:$4 sm:$0xff]   ;;  %v3258_v61 = vld [vmem:[%s4579_s1 + $0x5cc] ss:$16 sps:$4 sm:$0xff]  }
  0x73   :  { %1363 = vmatpush2.bf16.msra.mxu0 %v3169_v63  ;;  %v3256_v63 = vld [vmem:[%s4579_s1 + $0x5c8] ss:$16 sps:$4 sm:$0xff]  }
  0x74   :  { %1441 = vmatpush2.bf16.msra.mxu1 %v3166_v62  ;;  %1364 = vmatprep.subr.bf16.mxu0 %v3177_v1  ;;  %v3261_v62 = vld [vmem:[%s4579_s1 + $0x38c] ss:$16 sps:$4 sm:$0xff]  }
  0x75   :  { %1442 = vmatprep.subr.bf16.mxu1 %v3174_v0  ;;  %v3259_v0 = vld [vmem:[%s4579_s1 + $0x388] ss:$16 sps:$4 sm:$0xff]   ;;  %v3264_v1 = vld [vmem:[%s4579_s1 + $0x5ac] ss:$16 sps:$4 sm:$0xff]  }
  0x77   :  { %1365 = vmatpush2.bf16.msra.mxu0 %v3175_v3  ;;  %v3262_v3 = vld [vmem:[%s4579_s1 + $0x5a8] ss:$16 sps:$4 sm:$0xff]  }
  0x78   :  { %1443 = vmatpush2.bf16.msra.mxu1 %v3172_v2  ;;  %1366 = vmatprep.subr.bf16.mxu0 %v3183_v5  ;;  %v3267_v2 = vld [vmem:[%s4579_s1 + $0x36c] ss:$16 sps:$4 sm:$0xff]  }
  0x79   :  { %1444 = vmatprep.subr.bf16.mxu1 %v3180_v4  ;;  %v3265_v4 = vld [vmem:[%s4579_s1 + $0x368] ss:$16 sps:$4 sm:$0xff]   ;;  %v3270_v5 = vld [vmem:[%s4579_s1 + $0x58c] ss:$16 sps:$4 sm:$0xff]  }
  0x7b   :  { %1367 = vmatpush2.bf16.msra.mxu0 %v3181_v7  ;;  %v3268_v7 = vld [vmem:[%s4579_s1 + $0x588] ss:$16 sps:$4 sm:$0xff]  }
  0x7c   :  { %1445 = vmatpush2.bf16.msra.mxu1 %v3178_v6  ;;  %1368 = vmatprep.subr.bf16.mxu0 %v3189_v11  ;;  %v3273_v6 = vld [vmem:[%s4579_s1 + $0x34c] ss:$16 sps:$4 sm:$0xff]  }
  0x7d   :  { %1446 = vmatprep.subr.bf16.mxu1 %v3186_v10  ;;  %v3271_v10 = vld [vmem:[%s4579_s1 + $0x348] ss:$16 sps:$4 sm:$0xff]   ;;  %v3276_v11 = vld [vmem:[%s4579_s1 + $0x56c] ss:$16 sps:$4 sm:$0xff]  }
  0x7f   :  { %1369 = vmatpush2.bf16.msra.mxu0 %v3187_v13  ;;  %v3274_v13 = vld [vmem:[%s4579_s1 + $0x568] ss:$16 sps:$4 sm:$0xff]  }
  0x80   :  { %1447 = vmatpush2.bf16.msra.mxu1 %v3184_v12  ;;  %1461 = vmatprep.subr.bf16.mxu0 %v3195_v17  ;;  %v3279_v12 = vld [vmem:[%s4579_s1 + $0x32c] ss:$16 sps:$4 sm:$0xff]  }
  0x81   :  { %1448 = vmatprep.subr.bf16.mxu1 %v3192_v14  ;;  %v3277_v14 = vld [vmem:[%s4579_s1 + $0x328] ss:$16 sps:$4 sm:$0xff]   ;;  %v3285_v17 = vld [vmem:[%s4579_s1 + $0x30c] ss:$16 sps:$4 sm:$0xff]  }
  0x82   :  { %1371 = vmatmul.mubr.bf16.vlgmr.msra.gmra.mxu0 %v3978_v20 }
  0x83   :  { %1462 = vmatpush1.bf16.msra.mxu0 %v3193_v21  ;;  %1493 = vmatprep.mubr.bf16.mxu0 %v3704_v52  ;;  %v3211_v52 = vld [vmem:[%s4579_s1 + $0x288] ss:$16 sps:$4 sm:$0xff]  }
  0x84   :  { %1449 = vmatpush2.bf16.msra.mxu1 %v3190_v18  ;;  %1463 = vmatprep.subr.bf16.mxu0 %v3201_v23  ;;  %v3280_v18 = vld [vmem:[%s4579_s1 + $0x548] ss:$16 sps:$4 sm:$0xff]   ;;  %v3291_v23 = vld [vmem:[%s4579_s1 + $0x60c] ss:$16 sps:$4 sm:$0xff]  }
  0x85   :  { %1450 = vmatprep.subr.bf16.mxu1 %v3198_v22  ;;  %v3283_v21 = vld [vmem:[%s4579_s1 + $0x308] ss:$16 sps:$4 sm:$0xff]   ;;  %v3288_v22 = vld [vmem:[%s4579_s1 + $0x52c] ss:$16 sps:$4 sm:$0xff]  }
  0x87   :  { %1464 = vmatpush1.bf16.msra.mxu0 %v3199_v25 }
  0x88   :  { %1451 = vmatpush2.bf16.msra.mxu1 %v3196_v24  ;;  %1465 = vmatprep.subr.bf16.mxu0 %v3207_v27 }
  0x89   :  { %1502 = vmatprep.subr.bf16.mxu1 %v3204_v26 }
  0x8b   :  { %1453 = vmatmul.mubr.bf16.vlgmr.msra.gmra.mxu1 %v3765_v8  ;;  %1466 = vmatpush1.bf16.msra.mxu0 %v3205_v29  ;;  %v3217_v8 = vld [vmem:[%s4579_s1 + $0x268] ss:$16 sps:$4 sm:$0xff]  }
  0x8c   :  { %1503 = vmatpush1.bf16.msra.mxu1 %v3202_v28  ;;  %1467 = vmatprep.subr.bf16.mxu0 %v3213_v31 }
  0x8d   :  { %1504 = vmatprep.subr.bf16.mxu1 %v3210_v30  ;;  %1534 = vmatprep.mubr.bf16.mxu1 %v3849_v36  ;;  %v3220_v36 = vld [vmem:[%s4579_s1 + $0x488] ss:$16 sps:$4 sm:$0xff]  }
  0x8f   :  { %1468 = vmatpush1.bf16.msra.mxu0 %v3211_v52 }
  0x90   :  { %1505 = vmatpush1.bf16.msra.mxu1 %v3208_v32  ;;  %1469 = vmatprep.subr.bf16.mxu0 %v3219_v34 }
  0x91   :  { %1506 = vmatprep.subr.bf16.mxu1 %v3216_v33 }
  0x93   :  { %1470 = vmatpush1.bf16.msra.mxu0 %v3217_v8 }
  0x94   :  { %1507 = vmatpush1.bf16.msra.mxu1 %v3214_v35  ;;  %1471 = vmatprep.subr.bf16.mxu0 %v3225_v38 }
  0x95   :  { %1508 = vmatprep.subr.bf16.mxu1 %v3222_v37 }
  0x97   :  { %1472 = vmatpush1.bf16.msra.mxu0 %v3223_v39 }
  0x98   :  { %1509 = vmatpush1.bf16.msra.mxu1 %v3220_v36  ;;  %1473 = vmatprep.subr.bf16.mxu0 %v3231_v41 }
  0x99   :  { %1510 = vmatprep.subr.bf16.mxu1 %v3228_v40 }
  0x9b   :  { %1474 = vmatpush1.bf16.msra.mxu0 %v3229_v43 }
  0x9c   :  { %1511 = vmatpush1.bf16.msra.mxu1 %v3226_v42  ;;  %1475 = vmatprep.subr.bf16.mxu0 %v3237_v45 }
  0x9d   :  { %1512 = vmatprep.subr.bf16.mxu1 %v3234_v44 }
  0x9f   :  { %1476 = vmatpush1.bf16.msra.mxu0 %v3235_v47 }
  0xa0   :  { %1513 = vmatpush1.bf16.msra.mxu1 %v3232_v46  ;;  %1477 = vmatprep.subr.bf16.mxu0 %v3243_v49 }
  0xa1   :  { %1514 = vmatprep.subr.bf16.mxu1 %v3240_v48 }
  0xa3   :  { %1478 = vmatpush2.bf16.msra.mxu0 %v3241_v51 }
  0xa4   :  { %1515 = vmatpush1.bf16.msra.mxu1 %v3238_v50  ;;  %1479 = vmatprep.subr.bf16.mxu0 %v3249_v54 }
  0xa5   :  { %1516 = vmatprep.subr.bf16.mxu1 %v3246_v53 }
  0xa7   :  { %1480 = vmatpush2.bf16.msra.mxu0 %v3247_v56 }
  0xa8   :  { %1517 = vmatpush1.bf16.msra.mxu1 %v3244_v55  ;;  %1481 = vmatprep.subr.bf16.mxu0 %v3255_v58 }
  0xa9   :  { %1518 = vmatprep.subr.bf16.mxu1 %v3252_v57 }
  0xab   :  { %1482 = vmatpush2.bf16.msra.mxu0 %v3253_v60 }
  0xac   :  { %1519 = vmatpush2.bf16.msra.mxu1 %v3250_v59  ;;  %1483 = vmatprep.subr.bf16.mxu0 %v3261_v62 }
  0xad   :  { %1520 = vmatprep.subr.bf16.mxu1 %v3258_v61 }
  0xaf   :  { %1484 = vmatpush2.bf16.msra.mxu0 %v3259_v0 }
  0xb0   :  { %1521 = vmatpush2.bf16.msra.mxu1 %v3256_v63  ;;  %1485 = vmatprep.subr.bf16.mxu0 %v3267_v2 }
  0xb1   :  { %1522 = vmatprep.subr.bf16.mxu1 %v3264_v1 }
  0xb3   :  { %1486 = vmatpush2.bf16.msra.mxu0 %v3265_v4 }
  0xb4   :  { %1523 = vmatpush2.bf16.msra.mxu1 %v3262_v3  ;;  %1487 = vmatprep.subr.bf16.mxu0 %v3273_v6 }
  0xb5   :  { %1524 = vmatprep.subr.bf16.mxu1 %v3270_v5 }
  0xb7   :  { %1488 = vmatpush2.bf16.msra.mxu0 %v3271_v10 }
  0xb8   :  { %1525 = vmatpush2.bf16.msra.mxu1 %v3268_v7  ;;  %1489 = vmatprep.subr.bf16.mxu0 %v3279_v12 }
  0xb9   :  { %1526 = vmatprep.subr.bf16.mxu1 %v3276_v11 }
  0xbb   :  { %1490 = vmatpush2.bf16.msra.mxu0 %v3277_v14 }
  0xbc   :  { %1527 = vmatpush2.bf16.msra.mxu1 %v3274_v13  ;;  %1491 = vmatprep.subr.bf16.mxu0 %v3285_v17 }
  0xbd   :  { %1528 = vmatprep.subr.bf16.mxu1 %v3282_v15 }
  0xbe   :  { %16 = vsyncpa [#allocation3], 0  ;;  %v3286_v24 = vld [vmem:[%s4579_s1 + $0x528] ss:$16 sps:$4 sm:$0xff]   ;;  %v3294_v26 = vld [vmem:[%s4579_s1 + $0x50c] ss:$16 sps:$4 sm:$0xff]  }
  0xbf   :  { %1492 = vmatpush2.bf16.msra.mxu0 %v3283_v21  ;;  %v3289_v25 = vld [vmem:[%s4579_s1 + $0x608] ss:$16 sps:$4 sm:$0xff]   ;;  %v3297_v27 = vld [vmem:[%s4581_s3 + $0x74] ss:$8 sps:$4 sm:$0xff]   ;;  %v3300_v30 = vld [vmem:[%s4581_s3 + $0x64] ss:$8 sps:$4 sm:$0xff]  }
  0xc0   :  { %1529 = vmatpush2.bf16.msra.mxu1 %v3280_v18  ;;  %1557 = vmatprep.subr.bf16.mxu0 %v3291_v23  ;;  %v3292_v28 = vld [vmem:[%s4579_s1 + $0x508] ss:$16 sps:$4 sm:$0xff]   ;;  %v3345_v32 = vld [vmem:[%s4581_s3 + $0x174] ss:$8 sps:$4 sm:$0xff]   ;;  %v3348_v52 = vld [vmem:[%s4581_s3 + $0x164] ss:$8 sps:$4 sm:$0xff]  }
  0xc1   :  { %1530 = vmatprep.subr.bf16.mxu1 %v3288_v22  ;;  %v3295_v29 = vld [vmem:[%s4581_s3 + $0x70] ss:$8 sps:$4 sm:$0xff]   ;;  %v3304_v33 = vld [vmem:[%s4581_s3 + $0x40] ss:$8 sps:$4 sm:$0xff]   ;;  %v3309_v35 = vld [vmem:[%s4581_s3 + $0x34] ss:$8 sps:$4 sm:$0xff]  }
  0xc2   :  { %1494 = vmatmul.mubr.bf16.vlgmr.msra.gmra.mxu0 %v3767_v9  ;;  %v3298_v9 = vld [vmem:[%s4581_s3 + $0x60] ss:$8 sps:$4 sm:$0xff]   ;;  %v3301_v31 = vld [vmem:[%s4581_s3 + $0x50] ss:$8 sps:$4 sm:$0xff]   ;;  %v3351_v8 = vld [vmem:[%s4581_s3 + $0x154] ss:$8 sps:$4 sm:$0xff]  }
  0xc3   :  { %1558 = vmatpush1.bf16.msra.mxu0 %v3289_v25  ;;  %1575 = vmatprep.mubr.bf16.mxu0 %v3485_v16  ;;  %v3303_v16 = vld [vmem:[%s4581_s3 + $0x54] ss:$8 sps:$4 sm:$0xff]   ;;  %v3346_v34 = vld [vmem:[%s4581_s3 + $0x160] ss:$8 sps:$4 sm:$0xff]   ;;  %v3307_v37 = vld [vmem:[%s4581_s3 + $0x30] ss:$8 sps:$4 sm:$0xff]  }
  0xc4   :  { %1531 = vmatpush2.bf16.msra.mxu1 %v3286_v24  ;;  %1988 = vmatprep.subr.bf16.mxu0 %v3297_v27  ;;  %v3349_v38 = vld [vmem:[%s4581_s3 + $0x150] ss:$8 sps:$4 sm:$0xff]   ;;  %v3312_v36 = vld [vmem:[%s4581_s3 + $0x24] ss:$8 sps:$4 sm:$0xff]   ;;  %v3310_v40 = vld [vmem:[%s4581_s3 + $0x20] ss:$8 sps:$4 sm:$0xff]  }
  0xc5   :  { %1532 = vmatprep.subr.bf16.mxu1 %v3294_v26  ;;  %v3354_v39 = vld [vmem:[%s4581_s3 + $0x144] ss:$8 sps:$4 sm:$0xff]   ;;  %v3352_v41 = vld [vmem:[%s4581_s3 + $0x140] ss:$8 sps:$4 sm:$0xff]   ;;  %v3315_v42 = vld [vmem:[%s4581_s3 + $0x14] ss:$8 sps:$4 sm:$0xff]  }
  0xc6   :  { %v3357_v43 = vld [vmem:[%s4581_s3 + $0x134] ss:$8 sps:$4 sm:$0xff]   ;;  %v3313_v44 = vld [vmem:[%s4581_s3 + $0x10] ss:$8 sps:$4 sm:$0xff]   ;;  %v3318_v46 = vld [vmem:[%s4581_s3 + $0x4] ss:$8 sps:$4 sm:$0xff]  }
  0xc7   :  { %v3355_v45 = vld [vmem:[%s4581_s3 + $0x130] ss:$8 sps:$4 sm:$0xff]   ;;  %v3360_v47 = vld [vmem:[%s4581_s3 + $0x124] ss:$8 sps:$4 sm:$0xff]   ;;  %v3316_v48 = vld [vmem:[%s4581_s3] ss:$8 sps:$4 sm:$0xff]  }
  0xc8   :  { %1533 = vmatpush2.bf16.msra.mxu1 %v3292_v28  ;;  %v3358_v49 = vld [vmem:[%s4581_s3 + $0x120] ss:$8 sps:$4 sm:$0xff]   ;;  %v3321_v50 = vld [vmem:[%s4581_s3 + $0xf4] ss:$8 sps:$4 sm:$0xff]   ;;  %v3319_v53 = vld [vmem:[%s4581_s3 + $0xf0] ss:$8 sps:$4 sm:$0xff]  }
  0xc9   :  { %2029 = vmatprep.subr.bf16.mxu1 %v3345_v32  ;;  %v3363_v51 = vld [vmem:[%s4581_s3 + $0x114] ss:$8 sps:$4 sm:$0xff]   ;;  %v3361_v54 = vld [vmem:[%s4581_s3 + $0x110] ss:$8 sps:$4 sm:$0xff]   ;;  %v3324_v55 = vld [vmem:[%s4581_s3 + $0xe4] ss:$8 sps:$4 sm:$0xff]  }
  0xca   :  { %2823 = vmatmul.mubr.msk.bf16.vlgmr.msra.gmra.mxu0 %vm1252_vm0, %v3796_v19  ;;  %v3306_v19 = vld [vmem:[%s4581_s3 + $0x44] ss:$8 sps:$4 sm:$0xff]   ;;  %v3322_v57 = vld [vmem:[%s4581_s3 + $0xe0] ss:$8 sps:$4 sm:$0xff]   ;;  %v3327_v59 = vld [vmem:[%s4581_s3 + $0xd4] ss:$8 sps:$4 sm:$0xff]  }
  0xcb   :  { %1535 = vmatmul.mubr.bf16.vlgmr.msra.gmra.mxu1 %v3978_v20  ;;  %1989 = vmatpush1.bf16.msra.mxu0 %v3295_v29  ;;  %v3343_v20 = vld [vmem:[%s4581_s3 + $0x170] ss:$8 sps:$4 sm:$0xff]   ;;  %v3366_v56 = vld [vmem:[%s4581_s3 + $0x104] ss:$8 sps:$4 sm:$0xff]   ;;  %v3364_v58 = vld [vmem:[%s4581_s3 + $0x100] ss:$8 sps:$4 sm:$0xff]  }
  0xcc   :  { %1990 = vmatprep.subr.bf16.mxu0 %v3300_v30  ;;  %2030 = vmatpush1.bf16.msra.mxu1 %v3343_v20  ;;  %v3369_v60 = vld [vmem:[%s4581_s3 + $0x1f4] ss:$8 sps:$4 sm:$0xff]   ;;  %v3325_v61 = vld [vmem:[%s4581_s3 + $0xd0] ss:$8 sps:$4 sm:$0xff]   ;;  %v3330_v63 = vld [vmem:[%s4581_s3 + $0xc4] ss:$8 sps:$4 sm:$0xff]  }
  0xcd   :  { %2031 = vmatprep.subr.bf16.mxu1 %v3348_v52  ;;  %v3367_v62 = vld [vmem:[%s4581_s3 + $0x1f0] ss:$8 sps:$4 sm:$0xff]   ;;  %v3372_v0 = vld [vmem:[%s4581_s3 + $0x1e4] ss:$8 sps:$4 sm:$0xff]   ;;  %v3328_v1 = vld [vmem:[%s4581_s3 + $0xc0] ss:$8 sps:$4 sm:$0xff]  }
  0xce   :  { %v3370_v2 = vld [vmem:[%s4581_s3 + $0x1e0] ss:$8 sps:$4 sm:$0xff]   ;;  %v3333_v3 = vld [vmem:[%s4581_s3 + $0xb4] ss:$8 sps:$4 sm:$0xff]   ;;  %v3331_v5 = vld [vmem:[%s4581_s3 + $0xb0] ss:$8 sps:$4 sm:$0xff]  }
  0xcf   :  { %1991 = vmatpush1.bf16.msra.mxu0 %v3298_v9  ;;  %v3375_v4 = vld [vmem:[%s4581_s3 + $0x1d4] ss:$8 sps:$4 sm:$0xff]   ;;  %v3373_v6 = vld [vmem:[%s4581_s3 + $0x1d0] ss:$8 sps:$4 sm:$0xff]   ;;  %v3336_v7 = vld [vmem:[%s4581_s3 + $0xa4] ss:$8 sps:$4 sm:$0xff]  }
  0xd0   :  { %1992 = vmatprep.subr.bf16.mxu0 %v3303_v16  ;;  %2032 = vmatpush1.bf16.msra.mxu1 %v3346_v34  ;;  %v3378_v10 = vld [vmem:[%s4581_s3 + $0x1c4] ss:$8 sps:$4 sm:$0xff]   ;;  %v3334_v11 = vld [vmem:[%s4581_s3 + $0xa0] ss:$8 sps:$4 sm:$0xff]   ;;  %v3339_v13 = vld [vmem:[%s4581_s3 + $0x94] ss:$8 sps:$4 sm:$0xff]  }
  0xd1   :  { %2033 = vmatprep.subr.bf16.mxu1 %v3351_v8  ;;  %v3376_v12 = vld [vmem:[%s4581_s3 + $0x1c0] ss:$8 sps:$4 sm:$0xff]   ;;  %v3337_v14 = vld [vmem:[%s4581_s3 + $0x90] ss:$8 sps:$4 sm:$0xff]   ;;  %v3342_v15 = vld [vmem:[%s4581_s3 + $0x84] ss:$8 sps:$4 sm:$0xff]  }
  0xd2   :  { %v3340_v21 = vld [vmem:[%s4581_s3 + $0x80] ss:$8 sps:$4 sm:$0xff]   ;;  %v3381_v24 = vld [vmem:[%s4581_s3 + $0x1b4] ss:$8 sps:$4 sm:$0xff]   ;;  %v3379_v25 = vld [vmem:[%s4581_s3 + $0x1b0] ss:$8 sps:$4 sm:$0xff]  }
  0xd3   :  { %1993 = vmatpush1.bf16.msra.mxu0 %v3301_v31  ;;  %v3384_v30 = vld [vmem:[%s4581_s3 + $0x1a4] ss:$8 sps:$4 sm:$0xff]   ;;  %v3382_v9 = vld [vmem:[%s4581_s3 + $0x1a0] ss:$8 sps:$4 sm:$0xff]   ;;  %v3385_v20 = vld [vmem:[%s4581_s3 + $0x190] ss:$8 sps:$4 sm:$0xff]  }
  0xd4   :  { %1994 = vmatprep.subr.bf16.mxu0 %v3306_v19  ;;  %2034 = vmatpush1.bf16.msra.mxu1 %v3349_v38  ;;  %v3387_v19 = vld [vmem:[%s4581_s3 + $0x194] ss:$8 sps:$4 sm:$0xff]   ;;  %v3388_v34 = vld [vmem:[%s4581_s3 + $0x180] ss:$8 sps:$4 sm:$0xff]   ;;  %vm3487_vm1 = vmmov 0  }
  0xd5   :  { %2035 = vmatprep.subr.bf16.mxu1 %v3354_v39  ;;  %v250_v38 = vld [vmem:[%s4580_s2] sm:$0xf] }
  0xd7   :  { %1995 = vmatpush1.bf16.msra.mxu0 %v3304_v33  ;;  %v3390_v33 = vld [vmem:[%s4581_s3 + $0x184] ss:$8 sps:$4 sm:$0xff]  }
  0xd8   :  { %1996 = vmatprep.subr.bf16.mxu0 %v3309_v35  ;;  %2036 = vmatpush1.bf16.msra.mxu1 %v3352_v41  ;;  %v252_v35 = vlaneseq }
  0xd9   :  { %2037 = vmatprep.subr.bf16.mxu1 %v3357_v43 }
  0xda   :  { %v253_v8 = vshrl.u32 %v252_v35, 7  ;;  %v3403_v35 = vld [vmem:[%s4583_s5 + $0x30] ss:$8 sps:$4 sm:$0xff]  }
  0xdb   :  { %1997 = vmatpush1.bf16.msra.mxu0 %v3307_v37 }
  0xdc   :  { %1998 = vmatprep.subr.bf16.mxu0 %v3312_v36  ;;  %2038 = vmatpush1.bf16.msra.mxu1 %v3355_v45  ;;  %v4382_v37 = vsub.s32 0, %v253_v8  ;;  %v4387_v36 = vsub.s32 1, %v253_v8 }
  0xdd   :  { %2039 = vmatprep.subr.bf16.mxu1 %v3360_v47 }
  0xde   :  { %v255_v39 = vrot.slane %v250_v38, %v4382_v37 }
  0xdf   :  { %1999 = vmatpush1.bf16.msra.mxu0 %v3310_v40  ;;  %v259_v40 = vrot.slane %v250_v38, %v4387_v36 }
  0xe0   :  { %2000 = vmatprep.subr.bf16.mxu0 %v3315_v42  ;;  %2040 = vmatpush1.bf16.msra.mxu1 %v3358_v49 }
  0xe1   :  { %2041 = vmatprep.subr.bf16.mxu1 %v3363_v51 }
  0xe3   :  { %2001 = vmatpush1.bf16.msra.mxu0 %v3313_v44 }
  0xe4   :  { %2002 = vmatprep.subr.bf16.mxu0 %v3318_v46  ;;  %2042 = vmatpush1.bf16.msra.mxu1 %v3361_v54 }
  0xe5   :  { %2043 = vmatprep.subr.bf16.mxu1 %v3366_v56 }
  0xe7   :  { %2003 = vmatpush1.bf16.msra.mxu0 %v3316_v48 }
  0xe8   :  { %2004 = vmatprep.subr.bf16.mxu0 %v3321_v50  ;;  %2044 = vmatpush1.bf16.msra.mxu1 %v3364_v58 }
  0xe9   :  { %2045 = vmatprep.subr.bf16.mxu1 %v3369_v60 }
  0xeb   :  { %2005 = vmatpush2.bf16.msra.mxu0 %v3319_v53 }
  0xec   :  { %2006 = vmatprep.subr.bf16.mxu0 %v3324_v55  ;;  %2046 = vmatpush2.bf16.msra.mxu1 %v3367_v62  ;;  %v262_v62 = vsub.s32 2, %v253_v8 }
  0xed   :  { %2047 = vmatprep.subr.bf16.mxu1 %v3372_v0 }
  0xef   :  { %2007 = vmatpush2.bf16.msra.mxu0 %v3322_v57 }
  0xf0   :  { %2008 = vmatprep.subr.bf16.mxu0 %v3327_v59  ;;  %2048 = vmatpush2.bf16.msra.mxu1 %v3370_v2 }
  0xf1   :  { %2049 = vmatprep.subr.bf16.mxu1 %v3375_v4 }
  0xf3   :  { %2009 = vmatpush2.bf16.msra.mxu0 %v3325_v61 }
  0xf4   :  { %2010 = vmatprep.subr.bf16.mxu0 %v3330_v63  ;;  %2050 = vmatpush2.bf16.msra.mxu1 %v3373_v6  ;;  %v266_v63 = vsub.s32 3, %v253_v8  ;;  %v3408_v8 = vld [vmem:[%s4583_s5 + $0x24] ss:$8 sps:$4 sm:$0xff]  }
  0xf5   :  { %2051 = vmatprep.subr.bf16.mxu1 %v3378_v10 }
  0xf7   :  { %2011 = vmatpush2.bf16.msra.mxu0 %v3328_v1  ;;  %v263_v1 = vrot.slane %v250_v38, %v262_v62  ;;  %v3441_v62 = vld [vmem:[%s4585_s7 + $0x70] sm:$0xff]  }
  0xf8   :  { %2012 = vmatprep.subr.bf16.mxu0 %v3333_v3  ;;  %2052 = vmatpush2.bf16.msra.mxu1 %v3376_v12  ;;  %v267_v3 = vrot.slane %v250_v38, %v266_v63  ;;  %v3406_v38 = vld [vmem:[%s4583_s5 + $0x20] ss:$8 sps:$4 sm:$0xff]   ;;  %v3442_v63 = vld [vmem:[%s4585_s7 + $0x30] sm:$0xff]  }
  0xf9   :  { %2053 = vmatprep.subr.bf16.mxu1 %v3381_v24 }
  0xfb   :  { %2013 = vmatpush2.bf16.msra.mxu0 %v3331_v5 }
  0xfc   :  { %2014 = vmatprep.subr.bf16.mxu0 %v3336_v7  ;;  %2054 = vmatpush2.bf16.msra.mxu1 %v3379_v25 }
  0xfd   :  { %2055 = vmatprep.subr.bf16.mxu1 %v3384_v30 }
  0xff   :  { %2015 = vmatpush2.bf16.msra.mxu0 %v3334_v11 }
 0x100   :  { %2016 = vmatprep.subr.bf16.mxu0 %v3339_v13  ;;  %2056 = vmatpush2.bf16.msra.mxu1 %v3382_v9  ;;  %v3391_v9 = vld [vmem:[%s4583_s5 + $0x70] ss:$8 sps:$4 sm:$0xff]  }
 0x101   :  { %2057 = vmatprep.subr.bf16.mxu1 %v3387_v19  ;;  %v3394_v19 = vld [vmem:[%s4583_s5 + $0x60] ss:$8 sps:$4 sm:$0xff]  }
 0x102   :  { %v1290_v17 = vpop.f32.mrf.mxu0 }
 0x103   :  { %v1331_v18 = vpop.f32.mrf.mxu1  ;;  %2017 = vmatpush2.bf16.msra.mxu0 %v3337_v14  ;;  %v1291_v41 = vadd.f32 %v1290_v17, %v255_v39  ;;  %v3411_v39 = vld [vmem:[%s4583_s5 + $0x14] ss:$8 sps:$4 sm:$0xff]  }
 0x104   :  { %v1292_v22 = vpop.f32.mrf.mxu0  ;;  %2018 = vmatprep.subr.bf16.mxu0 %v3342_v15  ;;  %2058 = vmatpush2.bf16.msra.mxu1 %v3385_v20  ;;  %v3399_v20 = vld [vmem:[%s4583_s5 + $0x54] ss:$8 sps:$4 sm:$0xff]  }
 0x105   :  { %v1333_v23 = vpop.f32.mrf.mxu1  ;;  %2059 = vmatprep.subr.bf16.mxu1 %v3390_v33  ;;  %v1293_v42 = vadd.f32 %v1292_v22, %v259_v40  ;;  %v1332_v43 = vadd.f32 %v1331_v18, %v1291_v41  ;;  %v3400_v33 = vld [vmem:[%s4583_s5 + $0x40] ss:$8 sps:$4 sm:$0xff]   ;;  %v3409_v40 = vld [vmem:[%s4583_s5 + $0x10] ss:$8 sps:$4 sm:$0xff]   ;;  %v3414_v41 = vld [vmem:[%s4583_s5 + $0x4] ss:$8 sps:$4 sm:$0xff]  }
 0x106   :  { %v1294_v26 = vpop.f32.mrf.mxu0 }
 0x107   :  { %v1335_v27 = vpop.f32.mrf.mxu1  ;;  %2019 = vmatpush2.bf16.msra.mxu0 %v3340_v21  ;;  %v1334_v45 = vadd.f32 %v1333_v23, %v1293_v42  ;;  %v3412_v42 = vld [vmem:[%s4583_s5] ss:$8 sps:$4 sm:$0xff]  }
 0x108   :  { %v1295_v28 = vpop.f32.mrf.mxu0  ;;  %2060 = vmatpush2.bf16.msra.mxu1 %v3388_v34  ;;  %v3405_v34 = vld [vmem:[%s4583_s5 + $0x34] ss:$8 sps:$4 sm:$0xff]  }
 0x109   :  { %v1336_v29 = vpop.f32.mrf.mxu1 }
 0x10b   :  { %v1413_v16 = vpop.f32.mrf.mxu1 }
 0x10d   :  { %v1415_v31 = vpop.f32.mrf.mxu1 }
 0x10f   :  { %v1417_v32 = vpop.f32.mrf.mxu1 }
 0x110   :  { %v3397_v32 = vld [vmem:[%s4583_s5 + $0x50] ss:$8 sps:$4 sm:$0xff]  }
 0x111   :  { %v1418_v52 = vpop.f32.mrf.mxu1 }
 0x112   :  { %v3402_v52 = vld [vmem:[%s4583_s5 + $0x44] ss:$8 sps:$4 sm:$0xff]  }
 0x142   :  { %v1372_v44 = vpop.f32.mrf.mxu0 }
 0x143   :  { %v1373_v46 = vadd.f32 %v1372_v44, %v1332_v43  ;;  %v3417_v43 = vld [vmem:[%s4583_s5 + $0xf4] ss:$8 sps:$4 sm:$0xff]   ;;  %v3415_v44 = vld [vmem:[%s4583_s5 + $0xf0] ss:$8 sps:$4 sm:$0xff]  }
 0x144   :  { %v1374_v47 = vpop.f32.mrf.mxu0 }
 0x145   :  { %v1414_v48 = vadd.f32 %v1413_v16, %v1373_v46  ;;  %v1375_v49 = vadd.f32 %v1374_v47, %v1334_v45  ;;  %v3393_v16 = vld [vmem:[%s4583_s5 + $0x74] ss:$8 sps:$4 sm:$0xff]   ;;  %v3420_v45 = vld [vmem:[%s4583_s5 + $0xe4] ss:$8 sps:$4 sm:$0xff]   ;;  %v3418_v46 = vld [vmem:[%s4583_s5 + $0xe0] ss:$8 sps:$4 sm:$0xff]  }
 0x146   :  { %v1376_v50 = vpop.f32.mrf.mxu0  ;;  %2278 = vmatprep.subr.bf16.mxu0 %v3393_v16  ;;  %v3423_v47 = vld [vmem:[%s4583_s5 + $0xd4] ss:$8 sps:$4 sm:$0xff]   ;;  %v3451_v16 = vld [vmem:[%s4585_s7 + $0x48] sm:$0xff]  }
 0x147   :  { %v1416_v51 = vadd.f32 %v1415_v31, %v1375_v49  ;;  %v1584_v53 = vmax.f32 %v1414_v48, 0.0  ;;  %v3396_v31 = vld [vmem:[%s4583_s5 + $0x64] ss:$8 sps:$4 sm:$0xff]   ;;  %v3421_v48 = vld [vmem:[%s4583_s5 + $0xd0] ss:$8 sps:$4 sm:$0xff]  }
 0x148   :  { %v1377_v54 = vpop.f32.mrf.mxu0  ;;  %v3426_v49 = vld [vmem:[%s4583_s5 + $0xc4] ss:$8 sps:$4 sm:$0xff]   ;;  %v3424_v50 = vld [vmem:[%s4583_s5 + $0xc0] ss:$8 sps:$4 sm:$0xff]  }
 0x149   :  { %v1585_v55 = vmax.f32 %v1416_v51, 0.0  ;;  %v1588_v58 = vpack.c.bf16 %v1584_v53, %v1584_v53  ;;  %v3429_v51 = vld [vmem:[%s4583_s5 + $0xb4] ss:$8 sps:$4 sm:$0xff]   ;;  %v3427_v53 = vld [vmem:[%s4583_s5 + $0xb0] ss:$8 sps:$4 sm:$0xff]  }
 0x14a   :  { %v3432_v54 = vld [vmem:[%s4583_s5 + $0xa4] ss:$8 sps:$4 sm:$0xff]  }
 0x14b   :  { %v1454_v56 = vpop.f32.mrf.mxu1  ;;  %v1589_v57 = vpack.c.bf16 %v1585_v55, %v1585_v55  ;;  %v3430_v55 = vld [vmem:[%s4583_s5 + $0xa0] ss:$8 sps:$4 sm:$0xff]  }
 0x14c   :  { %v1455_v5 = vadd.f32 %v1454_v56, %v263_v1  ;;  %v3435_v56 = vld [vmem:[%s4583_s5 + $0x94] ss:$8 sps:$4 sm:$0xff]   ;;  %v3444_v1 = vld [vmem:[%s4585_s7 + $0x28] sm:$0xff]  }
 0x14d   :  { %v1456_v59 = vpop.f32.mrf.mxu1  ;;  %2020 = vmatprep.mubr.bf16.mxu0 %v1589_v57  ;;  %v3433_v57 = vld [vmem:[%s4583_s5 + $0x90] ss:$8 sps:$4 sm:$0xff]  }
 0x14e   :  { %2021 = vmatmul.mubr.bf16.vlgmr.msra.gmra.mxu0 %v1588_v58  ;;  %v1457_v7 = vadd.f32 %v1456_v59, %v267_v3  ;;  %v3438_v58 = vld [vmem:[%s4583_s5 + $0x84] ss:$8 sps:$4 sm:$0xff]   ;;  %v3436_v59 = vld [vmem:[%s4583_s5 + $0x80] ss:$8 sps:$4 sm:$0xff]  }
 0x14f   :  { %v1458_v60 = vpop.f32.mrf.mxu1  ;;  %2279 = vmatpush1.bf16.msra.mxu0 %v3391_v9  ;;  %v3446_v3 = vld [vmem:[%s4585_s7 + $0x20] sm:$0xff]  }
 0x150   :  { %2280 = vmatprep.subr.bf16.mxu0 %v3396_v31  ;;  %v3439_v60 = vld [vmem:[%s4585_s7 + $0x78] sm:$0xff]   ;;  %v3452_v31 = vld [vmem:[%s4585_s7 + $0x8] sm:$0xff]  }
 0x151   :  { %v1459_v61 = vpop.f32.mrf.mxu1  ;;  %2946 = vmatprep.subr.bf16.mxu1 %v3439_v60 }
 0x152   :  { %v3440_v61 = vld [vmem:[%s4585_s7 + $0x38] sm:$0xff]  }
 0x153   :  { %2281 = vmatpush1.bf16.msra.mxu0 %v3394_v19  ;;  %v3453_v19 = vld [vmem:[%s4585_s7 + $0x40] sm:$0xff]  }
 0x154   :  { %2282 = vmatprep.subr.bf16.mxu0 %v3399_v20  ;;  %v3454_v20 = vld [vmem:[%s4585_s7] sm:$0xff]  }
 0x157   :  { %2283 = vmatpush1.bf16.msra.mxu0 %v3397_v32  ;;  %v3486_v32 = vmov 0.0  }
 0x158   :  { %2284 = vmatprep.subr.bf16.mxu0 %v3402_v52  ;;  %v2106_v52 = vld [vmem:[%s4584_s6] sm:$0x3] }
 0x15b   :  { %2285 = vmatpush1.bf16.msra.mxu0 %v3400_v33  ;;  %v2111_v33 = vrot.slane %v2106_v52, %v4382_v37 }
 0x15c   :  { %2286 = vmatprep.subr.bf16.mxu0 %v3405_v34  ;;  %v2115_v34 = vrot.slane %v2106_v52, %v4387_v36 }
 0x15f   :  { %2287 = vmatpush1.bf16.msra.mxu0 %v3403_v35 }
 0x160   :  { %2288 = vmatprep.subr.bf16.mxu0 %v3408_v8 }
 0x163   :  { %2289 = vmatpush1.bf16.msra.mxu0 %v3406_v38 }
 0x164   :  { %2290 = vmatprep.subr.bf16.mxu0 %v3411_v39 }
 0x167   :  { %2291 = vmatpush1.bf16.msra.mxu0 %v3409_v40 }
 0x168   :  { %2292 = vmatprep.subr.bf16.mxu0 %v3414_v41 }
 0x16b   :  { %2293 = vmatpush1.bf16.msra.mxu0 %v3412_v42 }
 0x16c   :  { %2294 = vmatprep.subr.bf16.mxu0 %v3417_v43 }
 0x16f   :  { %2295 = vmatpush2.bf16.msra.mxu0 %v3415_v44 }
 0x170   :  { %2296 = vmatprep.subr.bf16.mxu0 %v3420_v45  ;;  %v3455_v45 = vld [vmem:[%s4587_s9 + $0x38] sm:$0xff]  }
 0x173   :  { %2297 = vmatpush2.bf16.msra.mxu0 %v3418_v46 }
 0x174   :  { %2298 = vmatprep.subr.bf16.mxu0 %v3423_v47  ;;  %v3458_v47 = vld [vmem:[%s4587_s9 + $0x20] sm:$0xff]  }
 0x177   :  { %2299 = vmatpush2.bf16.msra.mxu0 %v3421_v48  ;;  %v3459_v48 = vld [vmem:[%s4587_s9 + $0x18] sm:$0xff]  }
 0x178   :  { %2300 = vmatprep.subr.bf16.mxu0 %v3426_v49  ;;  %v3460_v49 = vld [vmem:[%s4587_s9 + $0x10] sm:$0xff]  }
 0x17b   :  { %2301 = vmatpush2.bf16.msra.mxu0 %v3424_v50  ;;  %v3461_v50 = vld [vmem:[%s4587_s9 + $0x8] sm:$0xff]  }
 0x17c   :  { %2302 = vmatprep.subr.bf16.mxu0 %v3429_v51  ;;  %v3462_v51 = vld [vmem:[%s4587_s9] sm:$0xff]  }
 0x17f   :  { %2303 = vmatpush2.bf16.msra.mxu0 %v3427_v53 }
 0x180   :  { %2304 = vmatprep.subr.bf16.mxu0 %v3432_v54  ;;  %v2920_v54 = vld [vmem:[%s4586_s8] ss:$0 sm:$0xff] }
 0x182   :  { %v1495_v0 = vpop.f32.mrf.mxu0 }
 0x183   :  { %v1496_v10 = vadd.f32 %v1495_v0, %v1455_v5  ;;  %2305 = vmatpush2.bf16.msra.mxu0 %v3430_v55  ;;  %v3443_v0 = vld [vmem:[%s4585_s7 + $0x68] sm:$0xff]   ;;  %v3448_v5 = vld [vmem:[%s4585_s7 + $0x18] sm:$0xff]  }
 0x184   :  { %v1497_v2 = vpop.f32.mrf.mxu0  ;;  %2306 = vmatprep.subr.bf16.mxu0 %v3435_v56 }
 0x185   :  { %v1498_v13 = vadd.f32 %v1497_v2, %v1457_v7  ;;  %v3445_v2 = vld [vmem:[%s4585_s7 + $0x60] sm:$0xff]   ;;  %v3450_v7 = vld [vmem:[%s4585_s7 + $0x10] sm:$0xff]  }
 0x186   :  { %v1499_v4 = vpop.f32.mrf.mxu0 }
 0x187   :  { %2307 = vmatpush2.bf16.msra.mxu0 %v3433_v57  ;;  %v3447_v4 = vld [vmem:[%s4585_s7 + $0x58] sm:$0xff]  }
 0x188   :  { %v1500_v6 = vpop.f32.mrf.mxu0  ;;  %2308 = vmatprep.subr.bf16.mxu0 %v3438_v58 }
 0x189   :  { %v3449_v6 = vld [vmem:[%s4585_s7 + $0x50] sm:$0xff]  }
 0x18a   :  { %v1577_v12 = vpop.f32.mrf.mxu0 }
 0x18b   :  { %v1536_v11 = vpop.f32.mrf.mxu1  ;;  %2309 = vmatpush2.bf16.msra.mxu0 %v3436_v59 }
 0x18c   :  { %v1537_v14 = vadd.f32 %v1536_v11, %v1496_v10  ;;  %v1579_v17 = vpop.f32.mrf.mxu0 }
 0x18d   :  { %v1538_v15 = vpop.f32.mrf.mxu1 }
 0x18e   :  { %v1578_v18 = vadd.f32 %v1577_v12, %v1537_v14  ;;  %v1539_v21 = vadd.f32 %v1538_v15, %v1498_v13  ;;  %v1581_v23 = vpop.f32.mrf.mxu0  ;;  %v1656_v14 = vld [vmem:[%s4582_s4] sm:$0x3] }
 0x18f   :  { %v1540_v22 = vpop.f32.mrf.mxu1  ;;  %v1661_v15 = vrot.slane %v1656_v14, %v4382_v37  ;;  %v3456_v37 = vld [vmem:[%s4587_s9 + $0x30] sm:$0xff]  }
 0x190   :  { %v1580_v24 = vadd.f32 %v1579_v17, %v1539_v21  ;;  %v1586_v25 = vmax.f32 %v1578_v18, 0.0  ;;  %v1582_v27 = vpop.f32.mrf.mxu0  ;;  %v1665_v17 = vrot.slane %v1656_v14, %v4387_v36  ;;  %v3457_v36 = vld [vmem:[%s4587_s9 + $0x28] sm:$0xff]   ;;  %s3488_s9 = smov [#allocation2]  }
 0x191   :  { %v1541_v26 = vpop.f32.mrf.mxu1  ;;  %s2618_s20 = sshll.u32 %s3488_s9, 4  ;;  %s2619_s20 = int_to_ptr.vmem [resolvable:$true] %s2618_s20 }
 0x192   :  { %v1587_v28 = vmax.f32 %v1580_v24, 0.0  ;;  %v1590_v30 = vpack.c.bf16 %v1586_v25, %v1586_v25  ;;  %s3463_s8 = scalar_lea.vmem %s2619_s20, 128  ;;  %p3468_p1 = scmp.lt.s32.totalorder %s2619_s20, %s2619_s20 }
 0x193   :  { %p3464_p0 = scmp.ne.s32.totalorder %s2619_s20, %s3463_s8  ;;  %p3469_p2 = scmp.lt.s32.totalorder %s3463_s8, %s3463_s8 }
 0x194   :  { %v1591_v29 = vpack.c.bf16 %v1587_v28, %v1587_v28 }
 0x195   :  { %p3470_p3 = por %p3469_p2, %p3468_p1 }
 0x196   :  { %2061 = vmatprep.mubr.bf16.mxu1 %v1591_v29 }
 0x197   :  { %2062 = vmatmul.mubr.bf16.vlgmr.msra.gmra.mxu1 %v1590_v30  ;;  %p3471_p4 = pnand %p3470_p3, %p3464_p0 }
 0x198   :  { %2947 = vmatpush3.bf16.msra.mxu1 %v3440_v61 }
 0x199   :  { %2948 = vmatprep.subr.bf16.mxu1 %v3441_v62  ;;  %v2937_v62 = vld [vmem:[%s4588_s10] ss:$0 sm:$0xff] }
 0x19c   :  { %2949 = vmatpush3.bf16.msra.mxu1 %v3442_v63 }
 0x19d   :  { %2950 = vmatprep.subr.bf16.mxu1 %v3443_v0 }
 0x1a0   :  { %2951 = vmatpush3.bf16.msra.mxu1 %v3444_v1 }
 0x1a1   :  { %2952 = vmatprep.subr.bf16.mxu1 %v3445_v2 }
 0x1a4   :  { %2953 = vmatpush3.bf16.msra.mxu1 %v3446_v3 }
 0x1a5   :  { %2954 = vmatprep.subr.bf16.mxu1 %v3447_v4 }
 0x1a8   :  { %2955 = vmatpush3.bf16.msra.mxu1 %v3448_v5 }
 0x1a9   :  { %2956 = vmatprep.subr.bf16.mxu1 %v3449_v6 }
 0x1ac   :  { %2957 = vmatpush3.bf16.msra.mxu1 %v3450_v7 }
 0x1ad   :  { %2958 = vmatprep.subr.bf16.mxu1 %v3451_v16 }
 0x1b0   :  { %2959 = vmatpush3.bf16.msra.mxu1 %v3452_v31 }
 0x1b1   :  { %2960 = vmatprep.subr.bf16.mxu1 %v3453_v19 }
 0x1b4   :  { %2961 = vmatpush3.bf16.msra.mxu1 %v3454_v20 }
 0x1b5   :  { %2977 = vmatprep.subr.bf16.mxu1 %v3486_v32 }
 0x20e   :  { %v2022_v10 = vpop.f32.mrf.mxu0 }
 0x20f   :  { %v2023_v18 = vadd.f32 %v2022_v10, %v1661_v15 }
 0x210   :  { %v2024_v11 = vpop.f32.mrf.mxu0 }
 0x211   :  { %v2025_v22 = vadd.f32 %v2024_v11, %v1665_v17 }
 0x212   :  { %v2026_v12 = vpop.f32.mrf.mxu0 }
 0x214   :  { %v2027_v13 = vpop.f32.mrf.mxu0 }
 0x257   :  { %v2063_v21 = vpop.f32.mrf.mxu1 }
 0x258   :  { %v2064_v23 = vadd.f32 %v2063_v21, %v2023_v18 }
 0x259   :  { %v2065_v24 = vpop.f32.mrf.mxu1 }
 0x25a   :  { %v2066_v25 = vadd.f32 %v2065_v24, %v2025_v22  ;;  %v2070_v26 = vmax.f32 %v2064_v23, 0.0 }
 0x25b   :  { %v2067_v27 = vpop.f32.mrf.mxu1 }
 0x25c   :  { %v2071_v28 = vmax.f32 %v2066_v25, 0.0  ;;  %v2072_v9 = vpack.c.bf16 %v2070_v26, %v2070_v26 }
 0x25d   :  { %v2068_v29 = vpop.f32.mrf.mxu1 }
 0x25e   :  { %v2073_v30 = vpack.c.bf16 %v2071_v28, %v2071_v28 }
 0x260   :  { %2310 = vmatprep.mubr.bf16.mxu0 %v2073_v30 }
 0x261   :  { %2311 = vmatmul.mubr.bf16.vlgmr.msra.gmra.mxu0 %v2072_v9 }
 0x321   :  { %v2312_v35 = vpop.f32.mrf.mxu0 }
 0x322   :  { %v2313_v8 = vadd.f32 %v2312_v35, %v2111_v33 }
 0x323   :  { %v2314_v38 = vpop.f32.mrf.mxu0 }
 0x324   :  { %v2315_v39 = vadd.f32 %v2314_v38, %v2115_v34  ;;  %v2319_v40 = vmax.f32 %v2313_v8, 0.0 }
 0x325   :  { %v2316_v41 = vpop.f32.mrf.mxu0 }
 0x326   :  { %v2320_v42 = vmax.f32 %v2315_v39, 0.0  ;;  %v2321_v46 = vpack.c.bf16 %v2319_v40, %v2319_v40 }
 0x327   :  { %v2317_v43 = vpop.f32.mrf.mxu0 }
 0x328   :  { %v2322_v44 = vpack.c.bf16 %v2320_v42, %v2320_v42 }
 0x32a   :  { %2490 = vmatprep.mubr.bf16.mxu1 %v2322_v44 }
 0x32b   :  { %2491 = vmatmul.mubr.bf16.vlgmr.msra.gmra.mxu1 %v2321_v46 }
 0x32c   :  { %2978 = vmatpush3.bf16.msra.mxu1 %v3455_v45  ;;  %2993 = vmatprep.mubr.msk.bf16.mxu1 %vm3487_vm1, %v3486_v32 }
 0x32d   :  { %2979 = vmatprep.subr.bf16.mxu1 %v3486_v32 }
 0x330   :  { %2980 = vmatpush3.bf16.msra.mxu1 %v3456_v37 }
 0x331   :  { %2981 = vmatprep.subr.bf16.mxu1 %v3486_v32 }
 0x334   :  { %2982 = vmatpush3.bf16.msra.mxu1 %v3457_v36 }
 0x335   :  { %2983 = vmatprep.subr.bf16.mxu1 %v3486_v32 }
 0x338   :  { %2984 = vmatpush3.bf16.msra.mxu1 %v3458_v47 }
 0x339   :  { %2985 = vmatprep.subr.bf16.mxu1 %v3486_v32 }
 0x33c   :  { %2986 = vmatpush3.bf16.msra.mxu1 %v3459_v48 }
 0x33d   :  { %2987 = vmatprep.subr.bf16.mxu1 %v3486_v32 }
 0x340   :  { %2988 = vmatpush3.bf16.msra.mxu1 %v3460_v49 }
 0x341   :  { %2989 = vmatprep.subr.bf16.mxu1 %v3486_v32 }
 0x344   :  { %2990 = vmatpush3.bf16.msra.mxu1 %v3461_v50 }
 0x345   :  { %2991 = vmatprep.subr.bf16.mxu1 %v3486_v32 }
 0x348   :  { %2992 = vmatpush3.bf16.msra.mxu1 %v3462_v51 }
 0x3eb   :  { %v2962_v53 = vpop.f32.mrf.mxu1 }
 0x3ed   :  { %v2963_v55 = vpop.f32.mrf.mxu1 }
 0x3ee   :  { %v2964_v56 = vadd.f32 %v2963_v55, %v2962_v53 }
 0x3ef   :  { %v2965_v57 = vpop.f32.mrf.mxu1 }
 0x3f0   :  { %v2493_v58 = vadd.f32 %v2964_v56, %v2920_v54 }
 0x3f1   :  { %v2966_v59 = vpop.f32.mrf.mxu1 }
 0x3f2   :  { %v2498_v60 = vmax.f32 %v2493_v58, 0.0 }
 0x3f4   :  { %v2499_v61 = vpack.c.bf16 %v2498_v60, %v2498_v60 }
 0x3f6   :  { %2994 = vmatmul.mubr.bf16.vlgmr.msra.gmra.mxu1 %v2499_v61 }
 0x4b6   :  { %v2605_v63 = vpop.f32.mrf.mxu1 }
 0x4b7   :  { %v2606_v0 = vadd.f32 %v2937_v62, %v2605_v63 }
 0x4b8   :  { %v2995_v1 = vpop.f32.mrf.mxu1 }
 0x4b9   :  { %2611 = vst [vmem:[#allocation2] sm:$0xff] %v2606_v0 }
 0x4ba   :  { %v2608_v2 = vpop.f32.mrf.mxu1 }
 0x4bb   :  { %3474 = shalt.err (!%p3471_p4)
}
 0x4bc   :  { %2621 = dma.vmem_to_hbm [thread:$0]  %s2619_s20, 128, %s4589_s11, [#allocation3]   ;;  %v2996_v3 = vpop.f32.mrf.mxu1 }
 0x4bd   :  { %3483 = dma.done.wait [#allocation3], 128  }
 0x4be   :  { %3484 = vsyncadd [#allocation3], 4294967168 }
 0x4bf   :  { %2625 = vsyncpa [#allocation3], 1 }

</bundles_post_ra>
